<compile_context>
chip_gen: v7x
topology: tpu7x:2x2x1
jax: 0.10.0
libtpu: 0.0.40
codegen_flags: <defaults>
</compile_context>

<pallas_src>
import functools
import math

import jax
import jax.numpy as jnp
from jax import lax
from jax.experimental import pallas as pl
from jax.experimental.pallas import tpu as pltpu


# ---------------------------------------------------------------------------
# Kernel 1: fused QKV projection (bf16 MXU, f32 accumulate).
# grid = (B, S // ts)
# ---------------------------------------------------------------------------
def _qkv_proj_kernel(x_ref, w_ref, b_ref, qkv_ref):
    x = x_ref[0].astype(jnp.bfloat16)                                # (ts, H)
    y = jnp.dot(x, w_ref[...], preferred_element_type=jnp.float32)   # (ts, 3H) f32
    qkv_ref[0] = (y + b_ref[...]).astype(qkv_ref.dtype)              # bf16 store


# ---------------------------------------------------------------------------
# Kernel 2: flash-style MHSA + fused output dense projection.
# grid = (B, num_q_tiles, num_kv_tiles); kv axis is a sequential reduction.
# Online-softmax state persists in VMEM scratch across kv steps.
# ---------------------------------------------------------------------------
def _flash_attn_out_kernel(q_ref, k_ref, v_ref, wo_ref, bo_ref, out_ref,
                           m_ref, l_ref, acc_ref, ctx_ref, *,
                           num_heads, head_dim, exp_in_bf16):
    ki = pl.program_id(2)
    n_kv = pl.num_programs(2)
    d = head_dim

    @pl.when(ki == 0)
    def _init():
        m_ref[...] = jnp.full(m_ref.shape, -1e30, dtype=jnp.float32)
        l_ref[...] = jnp.zeros(l_ref.shape, dtype=jnp.float32)
        acc_ref[...] = jnp.zeros(acc_ref.shape, dtype=jnp.float32)

    # 1/sqrt(head_dim) is already folded into Wq / bq (host-side pack time),
    # so no per-step score scaling is needed here.
    q = q_ref[0]      # (tq, H)  bf16
    k = k_ref[0]      # (tk, H)  bf16
    v = v_ref[0]      # (tk, H)  bf16

    # Static unroll over heads: column slices instead of physical
    # reshape+transpose of the (S, H) activations.
    # TODO(synk): if MLIR shows XLU/lane-shift copies for the 64-wide odd-head
    # slices, emit per-head-transposed K from kernel 1 instead.
    for h in range(num_heads):
        qh = q[:, h * d:(h + 1) * d]                                 # (tq, d)
        kh = k[:, h * d:(h + 1) * d]                                 # (tk, d)
        vh = v[:, h * d:(h + 1) * d]                                 # (tk, d)

        # scores: contract head dim of both operands (no physical k^T)
        s = lax.dot_general(qh, kh, (((1,), (1,)), ((), ())),
                            preferred_element_type=jnp.float32)      # (tq, tk)

        # online softmax update (m/l/acc kept in f32)
        m_prev = m_ref[h]                                            # (tq, 1)
        m_new = jnp.maximum(m_prev, jnp.max(s, axis=-1, keepdims=True))
        alpha = jnp.exp(m_prev - m_new)                              # (tq, 1) f32
        if exp_in_bf16:
            # v6e/v7x: bf16 EUP/VPU path. Subtract in f32, exp in bf16, feed
            # bf16 p straight into the P@V MXU call.
            p = jnp.exp((s - m_new).astype(jnp.bfloat16))            # (tq, tk) bf16
            l_ref[h] = alpha * l_ref[h] + jnp.sum(
                p.astype(jnp.float32), axis=-1, keepdims=True)
            pv = jnp.dot(p, vh, preferred_element_type=jnp.float32)
        else:
            # v5e (no bf16 VPU/EUP): keep the elementwise math in f32.
            p = jnp.exp(s - m_new)                                   # (tq, tk) f32
            l_ref[h] = alpha * l_ref[h] + jnp.sum(p, axis=-1, keepdims=True)
            pv = jnp.dot(p.astype(jnp.bfloat16), vh,
                         preferred_element_type=jnp.float32)
        acc_ref[h] = alpha * acc_ref[h] + pv
        m_ref[h] = m_new

    @pl.when(ki == n_kv - 1)
    def _finalize():
        # Normalize each head into a lane-dense (tq, H) bf16 context buffer
        # (column slice h*d:(h+1)*d), ...
        for h in range(num_heads):
            inv_l = pl.reciprocal(l_ref[h], approx=True)             # (tq, 1)
            ctx_ref[:, h * d:(h + 1) * d] = (acc_ref[h] * inv_l).astype(jnp.bfloat16)
        # ... then a SINGLE full-contraction-depth MXU matmul fuses the head
        # merge with the output dense:  out = ctx @ Wo + bo.
        out = jnp.dot(ctx_ref[...], wo_ref[...],
                      preferred_element_type=jnp.float32)            # (tq, H) f32
        out_ref[0] = (out + bo_ref[...]).astype(out_ref.dtype)


def _bf16_exp_supported():
    """bf16 EUP/VPU datapaths exist on v6e/v7x but not v5e (or older)."""
    try:
        kind = jax.devices()[0].device_kind.lower()
    except Exception:
        return False
    return ("v6" in kind) or ("v7" in kind)


def yolos_attention(hidden_states, params, *, num_heads,
                    tq=256, tk=256, ts=256, exp_in_bf16=None):
    """hidden_states: (B, S, H) float32.  params: wq,bq,wk,bk,wv,bv,wo,bo
    with weights pre-transposed to (in, out).  Eval mode only."""
    B, S, H = hidden_states.shape
    assert H % num_heads == 0, "hidden size must divide num_heads"
    head_dim = H // num_heads
    assert H % 128 == 0, "H should be a multiple of 128 (lane-dense layout)"
    tq, tk, ts = min(tq, S), min(tk, S), min(ts, S)
    assert S % tq == 0 and S % tk == 0 and S % ts == 0, "S must tile evenly"
    # TODO(synk): attention-probs dropout / hidden dropout / head_mask are
    # omitted (eval mode, head_mask=None) — do not use this kernel in training.
    # TODO(synk): real YOLOS sequence lengths (1 + patches + 100) are not
    # multiples of the tile size; a padded-kv mask is required before
    # production use.
    if exp_in_bf16 is None:
        exp_in_bf16 = _bf16_exp_supported()

    bf16 = jnp.bfloat16
    scale = 1.0 / math.sqrt(head_dim)
    # One-time host-side packing / casting of the resident weights.
    # Fold the 1/sqrt(head_dim) score scale into Wq and bq (free at pack time,
    # removes num_heads*tq*tk VPU multiplies per kv step).
    wqkv = jnp.concatenate(
        [params["wq"] * scale, params["wk"], params["wv"]],
        axis=1).astype(bf16)                                           # (H, 3H)
    bqkv = jnp.concatenate(
        [params["bq"] * scale, params["bk"], params["bv"]],
        axis=1).astype(jnp.float32)                                    # (1, 3H)
    wo = params["wo"].astype(bf16)                                     # (H, H)
    bo = params["bo"].astype(jnp.float32)                              # (1, H)

    # 32 MiB is the safe scoped limit on all generations (incl. v7x's 64 MiB
    # physical VMEM); at tq=tk=ts=256 and H<=1024 both kernels use well under
    # 16 MiB, so no per-generation limit is needed here.
    vmem_limit = 32 * 1024 * 1024
    # TODO(synk): mark the resident weight specs pipeline_mode=pl.Buffered(1)
    # to skip their double-buffering once larger H/S configs need the headroom.

    # ---- kernel 1: QKV projection -> (B, S, 3H) bf16 in HBM ----
    qkv = pl.pallas_call(
        _qkv_proj_kernel,
        out_shape=jax.ShapeDtypeStruct((B, S, 3 * H), bf16),
        grid_spec=pltpu.PrefetchScalarGridSpec(
            num_scalar_prefetch=0,
            grid=(B, S // ts),
            in_specs=[
                pl.BlockSpec((1, ts, H), lambda b, si: (b, si, 0)),
                pl.BlockSpec((H, 3 * H), lambda b, si: (0, 0)),
                pl.BlockSpec((1, 3 * H), lambda b, si: (0, 0)),
            ],
            out_specs=pl.BlockSpec((1, ts, 3 * H), lambda b, si: (b, si, 0)),
        ),
        compiler_params=pltpu.CompilerParams(
            dimension_semantics=("parallel", "parallel"),
            vmem_limit_bytes=vmem_limit),
    )(hidden_states, wqkv, bqkv)

    # ---- kernel 2: flash attention + fused output dense ----
    kernel = functools.partial(_flash_attn_out_kernel,
                               num_heads=num_heads, head_dim=head_dim,
                               exp_in_bf16=exp_in_bf16)
    out = pl.pallas_call(
        kernel,
        out_shape=jax.ShapeDtypeStruct((B, S, H), hidden_states.dtype),
        grid_spec=pltpu.PrefetchScalarGridSpec(
            num_scalar_prefetch=0,
            grid=(B, S // tq, S // tk),
            in_specs=[
                # q / k / v are column blocks 0 / 1 / 2 of the fused qkv array
                pl.BlockSpec((1, tq, H), lambda b, qi, ki: (b, qi, 0)),
                pl.BlockSpec((1, tk, H), lambda b, qi, ki: (b, ki, 1)),
                pl.BlockSpec((1, tk, H), lambda b, qi, ki: (b, ki, 2)),
                pl.BlockSpec((H, H), lambda b, qi, ki: (0, 0)),   # Wo (resident)
                pl.BlockSpec((1, H), lambda b, qi, ki: (0, 0)),   # bo
            ],
            out_specs=pl.BlockSpec((1, tq, H), lambda b, qi, ki: (b, qi, 0)),
            scratch_shapes=[
                pltpu.VMEM((num_heads, tq, 1), jnp.float32),         # m
                pltpu.VMEM((num_heads, tq, 1), jnp.float32),         # l
                pltpu.VMEM((num_heads, tq, head_dim), jnp.float32),  # acc
                pltpu.VMEM((tq, H), jnp.bfloat16),                   # ctx (lane-dense)
            ],
        ),
        compiler_params=pltpu.CompilerParams(
            dimension_semantics=("parallel", "parallel", "arbitrary"),
            vmem_limit_bytes=vmem_limit),
    )(qkv, qkv, qkv, wo, bo)
    return out


def _reference(hidden_states, params, *, num_heads):
    """Pure-JAX f32 reference mirroring the PyTorch forward (eval mode)."""
    B, S, H = hidden_states.shape
    d = H // num_heads

    def lin(x, w, b):
        return x @ w + b  # w already stored as (in, out)

    q = lin(hidden_states, params["wq"], params["bq"])
    k = lin(hidden_states, params["wk"], params["bk"])
    v = lin(hidden_states, params["wv"], params["bv"])

    def split(x):
        return x.reshape(B, S, num_heads, d).transpose(0, 2, 1, 3)

    q, k, v = split(q), split(k), split(v)
    scores = jnp.einsum('bhqd,bhkd->bhqk', q, k) / math.sqrt(d)
    probs = jax.nn.softmax(scores, axis=-1)
    ctx = jnp.einsum('bhqk,bhkd->bhqd', probs, v)
    ctx = ctx.transpose(0, 2, 1, 3).reshape(B, S, H)
    return lin(ctx, params["wo"], params["bo"])


def make_params(key, hidden_size):
    """Deterministic synthetic parameters (nn.Linear-like, pre-transposed)."""
    keys = jax.random.split(key, 8)
    scale = 1.0 / math.sqrt(hidden_size)

    def w(k):
        return (jax.random.normal(k, (hidden_size, hidden_size), jnp.float32)
                * scale)

    def b(k):
        return jax.random.normal(k, (1, hidden_size), jnp.float32) * 0.01

    return {
        "wq": w(keys[0]), "bq": b(keys[1]),
        "wk": w(keys[2]), "bk": b(keys[3]),
        "wv": w(keys[4]), "bv": b(keys[5]),
        "wo": w(keys[6]), "bo": b(keys[7]),
    }


if __name__ == "__main__":
    # Small but hardware-aligned config: batch=2, seq=256, hidden=256, 4 heads
    # (head_dim=64).  S and H are multiples of 128 -> lane-dense (8,128) tiles;
    # with the default 256-wide tiles the grid is (2, 1, 1), keeping 2 units of
    # parallel work (enough for v7x's two TensorCores).
    B, S, H, NH = 2, 256, 256, 4

    key = jax.random.PRNGKey(0)
    k_x, k_p = jax.random.split(key)
    hidden_states = jax.random.normal(k_x, (B, S, H), jnp.float32)
    params = make_params(k_p, H)

    out = yolos_attention(hidden_states, params, num_heads=NH)
    out = jax.block_until_ready(out)

    ref = _reference(hidden_states, params, num_heads=NH)
    assert out.shape == (B, S, H)
    # bf16 MXU operands (+ bf16 exp on v6e/v7x) => ~1e-2-level deviation vs
    # the f32 reference.
    max_err = float(jnp.max(jnp.abs(out - ref)))
    assert jnp.allclose(out, ref, atol=5e-2, rtol=5e-2), (
        f"mismatch vs reference (max abs err {max_err})")

    print("KERNEL_OK")
</pallas_src>

<mosaic_0001>
module attributes {stable_mosaic.version = 11 : i64} {
  func.func @_qkv_proj_kernel(%arg0: i32, %arg1: i32, %arg2: memref<1x256x256xf32, #tpu.memory_space<vmem>>, %arg3: memref<256x768xbf16, #tpu.memory_space<vmem>>, %arg4: memref<1x768xf32, #tpu.memory_space<vmem>>, %arg5: memref<1x256x768xbf16, #tpu.memory_space<vmem>>) attributes {dimension_semantics = [#tpu.dimension_semantics<parallel>, #tpu.dimension_semantics<parallel>], iteration_bounds = array<i64: 2, 1>, scalar_prefetch = 0 : i64, scratch_operands = 0 : i64, tpu.core_type = #tpu.core_type<tc>, window_params = [{transform_indices = @transform_0, window_bounds = array<i64: 1, 256, 256>}, {pipeline_mode = #tpu.pipeline_mode<synchronous>, transform_indices = @transform_1, window_bounds = array<i64: 256, 768>}, {pipeline_mode = #tpu.pipeline_mode<synchronous>, transform_indices = @transform_2, window_bounds = array<i64: 1, 768>}, {transform_indices = @transform_3, window_bounds = array<i64: 1, 256, 768>}]} {
    %c0 = arith.constant 0 : index
    %c0_0 = arith.constant 0 : index
    %c0_1 = arith.constant 0 : index
    %0 = vector.load %arg2[%c0, %c0_0, %c0_1] : memref<1x256x256xf32, #tpu.memory_space<vmem>>, vector<1x256x256xf32>
    %1 = vector.shape_cast %0 : vector<1x256x256xf32> to vector<256x256xf32>
    %2 = arith.truncf %1 : vector<256x256xf32> to vector<256x256xbf16>
    %c0_2 = arith.constant 0 : index
    %c0_3 = arith.constant 0 : index
    %3 = vector.load %arg3[%c0_2, %c0_3] : memref<256x768xbf16, #tpu.memory_space<vmem>>, vector<256x768xbf16>
    %cst = arith.constant dense<0.000000e+00> : vector<256x768xf32>
    %4 = tpu.matmul %2, %3, %cst {dimension_numbers = #tpu.dot_dimension_numbers<[1], [0], [0], [1], [0, 0, 1, 1], [], []>} : vector<256x256xbf16>, vector<256x768xbf16>, vector<256x768xf32> -> vector<256x768xf32>
    %c0_4 = arith.constant 0 : index
    %c0_5 = arith.constant 0 : index
    %5 = vector.load %arg4[%c0_4, %c0_5] : memref<1x768xf32, #tpu.memory_space<vmem>>, vector<1x768xf32>
    %6 = vector.broadcast %5 : vector<1x768xf32> to vector<256x768xf32>
    %7 = arith.addf %4, %6 : vector<256x768xf32>
    %8 = arith.truncf %7 : vector<256x768xf32> to vector<256x768xbf16>
    %c0_6 = arith.constant 0 : index
    %c0_7 = arith.constant 0 : index
    %c0_8 = arith.constant 0 : index
    %9 = vector.load %arg5[%c0_6, %c0_7, %c0_8] : memref<1x256x768xbf16, #tpu.memory_space<vmem>>, vector<1x256x768xbf16>
    %10 = vector.shape_cast %9 : vector<1x256x768xbf16> to vector<256x768xbf16>
    %11 = vector.shape_cast %8 : vector<256x768xbf16> to vector<1x256x768xbf16>
    tpu.vector_store %arg5[%c0_6, %c0_7, %c0_8], %11 {strides = array<i32>} : memref<1x256x768xbf16, #tpu.memory_space<vmem>>, vector<1x256x768xbf16>,
    return
  }
  func.func @transform_0(%arg0: i32, %arg1: i32) -> (i32, i32, i32) {
    %c0_i32 = arith.constant 0 : i32
    %c0_i32_0 = arith.constant 0 : i32
    return %arg0, %arg1, %c0_i32 : i32, i32, i32
  }
  func.func @transform_1(%arg0: i32, %arg1: i32) -> (i32, i32) {
    %c0_i32 = arith.constant 0 : i32
    %c0_i32_0 = arith.constant 0 : i32
    %c0_i32_1 = arith.constant 0 : i32
    return %c0_i32, %c0_i32_0 : i32, i32
  }
  func.func @transform_2(%arg0: i32, %arg1: i32) -> (i32, i32) {
    %c0_i32 = arith.constant 0 : i32
    %c0_i32_0 = arith.constant 0 : i32
    %c0_i32_1 = arith.constant 0 : i32
    return %c0_i32, %c0_i32_0 : i32, i32
  }
  func.func @transform_3(%arg0: i32, %arg1: i32) -> (i32, i32, i32) {
    %c0_i32 = arith.constant 0 : i32
    %c0_i32_0 = arith.constant 0 : i32
    return %arg0, %arg1, %c0_i32 : i32, i32, i32
  }
}

</mosaic_0001>

<bundles_post_ra>
// kernel: tpu_custom_call.1
= control target key start
LH: loop header
LB: loop body
LE: loop exit
PB: predicated region body
PF: predicated region fallthrough
CT: control target
= control target key end

     0   :  { %8 = vsyncpa [#allocation3], 0  ;;  %s3776_s0 = inlined_call_operand.hbm [shape: f32[2,256,256], index: 0, kind: input, shape index: {}]   ;;  %s3777_s1 = inlined_call_operand.hbm [shape: bf16[256,768], index: 1, kind: input, shape index: {}]   ;;  %s3778_s2 = inlined_call_operand.vmem [shape: f32[1,768], index: 2, kind: input, shape index: {}]   ;;  %s3779_s3 = inlined_call_operand.hbm [shape: bf16[2,256,768], index: 3, kind: output, shape index: {}]  }
   0x1   :  { %10 = vsyncpa [#allocation3 + $0x1], 0 }
   0x2   :  { %11 = vsyncpa [#allocation6], 0 }
   0x3   :  { %12 = vsyncpa [#allocation4], 0 }
   0x4   :  { %14 = vsyncpa [#allocation4 + $0x1], 0  ;;  %s3029_s12 = smov 0   ;;  %s3031_s13 = smov 0  }
   0x5   :  { %s3033_s14 = smov 0   ;;  %s3035_s15 = smov 0  }
   0x6   :  { %s3037_s16 = smov 0   ;;  %s3039_s17 = smov 0  }
   0x7 LB: > { %s2294_s18 = sadd.s32 4294967295, %s2998_s17   ;;  %s2295_s19 = sadd.s32 4294967294, %s2998_s17   ;;  %s2998_s17 = sphi %s3039_s17, %s20_s17   ;;  %s2994_s16 = sphi %s3037_s16, %s3803_s16   ;;  %s2990_s15 = sphi %s3035_s15, %s3802_s15   ;;  %s2986_s14 = sphi %s3033_s14, %s3801_s14   ;;  %s2982_s13 = sphi %s3031_s13, %s3800_s13   ;;  %s2978_s12 = sphi %s3029_s12, %s3799_s12  }
   0x8   : > { %p54_p0 = scmp.ne.s32.totalorder %s2982_s13, %s2978_s12  ;;  %p3063_p1 = scmp.eq.s32.totalorder %s2294_s18, 0 }
   0x9   : > { %p3067_p2 = scmp.eq.s32.totalorder %s2294_s18, 1  ;;  %p128_p3 = scmp.eq.s32.totalorder %s2295_s19, 1 }
   0xa   : > { %s3784_s20 = scalar_select %p3063_p1, 1, 0 }
   0xb   : > { %s3785_s21 = scalar_select %p3067_p2, 1, 0 }
   0xc   : > { %p3073_p4 = por %p3063_p1, %p54_p0  ;;  %p2296_p5 = scmp.ge.s32.totalorder %s2998_s17, 1 }
   0xd   : > { %p3078_p6 = por %p128_p3, %p54_p0  ;;  %p135_p7 = scmp.lt.s32.totalorder %s2998_s17, 3 }
   0xe   : > { %s3786_s22 = scalar_select %p3073_p4, 1, 0 }
   0xf   : > { %s3787_s23 = scalar_select %p3078_p6, 1, 0 }
  0x10   : > { %p3083_p8 = pnand %p2296_p5, %p135_p7  ;;  %s3000_s25 = smov [#allocation5]  }
  0x11   : > { %s147_s26 = sshll.u32 %s3000_s25, 4  ;;  %s32_s28 = sadd.s32 1, %s2994_s16  ;;  %s148_s26 = int_to_ptr.vmem [resolvable:$true] %s147_s26 }
  0x12   : > { %s3788_s24 = scalar_select %p3083_p8, 1, 0 }
  0x13   : > { %p2639_p9 = pneg %p3083_p8  ;;  %s2854_s4 = scalar_lea.hbm %s3777_s1, 12288 }
  0x14   : > { %p2855_p12 = scmp.ne.s32.totalorder %s3777_s1, %s2854_s4  ;;  %p2861_p5 = scmp.lt.u32.totalorder %s2854_s4, %s3777_s1 }
  0x15   : > { %p3092_p11 = pnand %p2639_p9, %p3063_p1 }
  0x17   : > { %p2856_p13 = pneg %p3092_p11 }
  0x19   : > { %p2857_p0 = pnand %p2856_p13, %p2855_p12 }
  0x1b   : > { %p2858_p3 = pneg %p2857_p0 }
  0x1d   : > { %p2863_p7 = pnand %p2861_p5, %p2858_p3 }
  0x1f   : > { %2866 = shalt.err (!%p2863_p7)
}
  0x20   : > { %s2867_s9 = scalar_lea.vmem %s148_s26, 12288  ;;  %p2875_p1 = scmp.lt.s32.totalorder %s148_s26, %s148_s26 }
  0x21   : > { %p2868_p9 = scmp.ne.s32.totalorder %s148_s26, %s2867_s9  ;;  %p2876_p4 = scmp.lt.s32.totalorder %s2867_s9, %s2867_s9 }
  0x23   : > { %p2870_p10 = pnand %p2868_p9, %p2856_p13  ;;  %p2877_p8 = por %p2876_p4, %p2875_p1 }
  0x25   : > { %p2871_p6 = pneg %p2870_p10 }
  0x27   : > { %p2878_p2 = pnand %p2877_p8, %p2871_p6 }
  0x29   : > { %2881 = shalt.err (!%p2878_p2)
}
  0x2a   : > { %s3001_s10 = smov 384   ;;  %s3002_s11 = smov 24  }
  0x2b   : > { %2642 = dma.hbm_to_vmem [thread:$0]  (!%p3092_p11), %s3777_s1, 12288, %s148_s26, [#allocation6], %s3001_s10, %s3001_s10, %s3002_s11  }
  0x2c   : > { %p34_p1 = scmp.ge.s32.totalorder %s32_s28, 2  ;;  %s41_s25 = sadd.s32 1, %s2986_s14 }
  0x2d   : > { %p48_p2 = scmp.ne.s32.totalorder %s2986_s14, %s2982_s13  ;;  %p49_p4 = scmp.eq.s32.totalorder %s2998_s17, 0 }
  0x2e   : > { %s3805_s28 = smov (%p34_p1, %s32_s28), 0  ;;  %p3791_p8 = scmp.ne.s32.totalorder %s3785_s21, 0 }
  0x2f   : > { %p3119_p6 = por %p49_p4, %p48_p2  ;;  %s36_s27 = ssub.s32 %s2994_s16, %s3805_s28 }
  0x30   : > { %p3125_p10 = por %p3791_p8, %p48_p2  ;;  %p2652_p12 = scmp.lt.s32.totalorder %s2998_s17, 2 }
  0x31   : > { %p39_p11 = scmp.eq.s32.totalorder %s36_s27, 0  ;;  %s164_s26 = sand.u32 1, %s2986_s14  }
  0x32   : > { %s2299_s4 = sshll.u32 %s164_s26, 9  ;;  %s2500_s6 = sshll.u32 %s2994_s16, 13 }
  0x33   : > { %s3134_s5 = scalar_select %p39_p11, %s2986_s14, %s41_s25  }
  0x34   : > { %s3140_s9 = scalar_lea.hbm %s3776_s0, %s2500_s6  ;;  %s168_s21 = scalar_lea.vmem [#allocation2], %s2299_s4 }
  0x35   : > { %s178_s10 = sshll.u32 %s168_s21, 4  ;;  %p3146_p13 = pnand %p2652_p12, %p3119_p6  ;;  %s3142_s10 = int_to_ptr.vmem [resolvable:$true] %s178_s10 }
  0x36   : > { %s3150_s18 = scalar_lea.sflag [#allocation3], %s164_s26  ;;  %s2882_s19 = scalar_lea.hbm %s3140_s9, 8192 }
  0x37   : > { %p2883_p0 = scmp.ne.s32.totalorder %s3140_s9, %s2882_s19  ;;  %p2884_p3 = pneg %p3146_p13 }
  0x38   : > { %s2887_s29 = scalar_lea.hbm %s3776_s0, 16384  ;;  %p2888_p9 = scmp.lt.u32.totalorder %s3140_s9, %s3776_s0 }
  0x39   : > { %p2885_p5 = pnand %p2884_p3, %p2883_p0  ;;  %p2889_p1 = scmp.lt.u32.totalorder %s2887_s29, %s2882_s19 }
  0x3a   : > { %p2891_p4 = scmp.lt.u32.totalorder %s2882_s19, %s3140_s9 }
  0x3b   : > { %p2886_p7 = pneg %p2885_p5  ;;  %p2890_p2 = por %p2889_p1, %p2888_p9 }
  0x3d   : > { %p2892_p6 = por %p2891_p4, %p2890_p2 }
  0x3f   : > { %p2893_p8 = pnand %p2892_p6, %p2886_p7 }
  0x41   : > { %2896 = shalt.err (!%p2893_p8)
}
  0x42   : > { %s2897_s26 = scalar_lea.vmem %s3142_s10, 8192  ;;  %s3003_s7 = smov [#allocation2]  }
  0x43   : > { %p2898_p12 = scmp.ne.s32.totalorder %s3142_s10, %s2897_s26  ;;  %s2902_s8 = sshll.u32 %s3003_s7, 4  ;;  %s2903_s8 = int_to_ptr.vmem [resolvable:$false] %s2902_s8 }
  0x44   : > { %s2904_s21 = scalar_lea.vmem %s2903_s8, 16384  ;;  %p2905_p5 = scmp.lt.s32.totalorder %s3142_s10, %s2903_s8 }
  0x45   : > { %p2900_p11 = pnand %p2898_p12, %p2884_p3  ;;  %p2906_p9 = scmp.lt.s32.totalorder %s2904_s21, %s2897_s26 }
  0x47   : > { %p2901_p0 = pneg %p2900_p11  ;;  %p2907_p1 = por %p2906_p9, %p2905_p5 }
  0x49   : > { %p2908_p2 = pnand %p2907_p1, %p2901_p0 }
  0x4b   : > { %2911 = shalt.err (!%p2908_p2)
}
  0x4c   : > { %s3004_s19 = smov 256   ;;  %s3005_s25 = smov 16  }
  0x4d   : > { %2646 = dma.hbm_to_vmem [thread:$0]  (!%p3146_p13), %s3140_s9, 8192, %s3142_s10, %s3150_s18, %s3004_s19, %s3004_s19, %s3005_s25  }
  0x4e   : > { %p3794_p3 = scmp.ne.s32.totalorder %s3788_s24, 0 }
  0x4f   : > { %s3181_s27 = sand.u32 (!%p3794_p3), 1, %s2982_s13   ;;  %p3795_p7 = scmp.ne.s32.totalorder (!%p3794_p3), %s3786_s22, 0 }
  0x50   : > { %190 = sbr.rel (%p3794_p3) target bundleno = 574 (0x23e), region = 32  ;;  %s2303_s29 = sshll.u32 (!%p3794_p3), %s3181_s27, 9 }
  0x51   : > { %s193_s4 = scalar_lea.sflag (!%p3794_p3), [#allocation3], %s3181_s27  ;;  %s3185_s6 = scalar_lea.vmem (!%p3794_p3), [#allocation2], %s2303_s29 }
  0x57   : > { %2965 = dma.done.wait (%p3795_p7), %s193_s4, 8192  }
  0x58   : > { %2967 = vsyncadd (%p3795_p7), %s193_s4, 4294959104  ;;  %p3796_p13 = scmp.ne.s32.totalorder %s3784_s20, 0 }
  0x5a   : > { %2969 = dma.done.wait (%p3796_p13), [#allocation6], 12288  }
  0x5b   : > { %2971 = vsyncadd (%p3796_p13), [#allocation6], 4294955008  ;;  %v2710_v0 = vld [vmem:[#allocation5 + $0x4] ss:$24 sps:$4 sm:$0xff]   ;;  %v2712_v1 = vld [vmem:[#allocation5] ss:$24 sps:$4 sm:$0xff]  }
  0x5c   : > { %929 = vmatprep.subr.bf16.mxu0 %v2710_v0  ;;  %2597 = vmatprep.subr.bf16.mxu1 %v2710_v0  ;;  %v2713_v2 = vld [vmem:[#allocation5 + $0x34] ss:$24 sps:$4 sm:$0xff]   ;;  %v2715_v3 = vld [vmem:[#allocation5 + $0x30] ss:$24 sps:$4 sm:$0xff]   ;;  %v2716_v4 = vld [vmem:[#allocation5 + $0x64] ss:$24 sps:$4 sm:$0xff]  }
  0x5d   : > { %930 = vmatpush1.bf16.msra.mxu0 %v2712_v1  ;;  %2613 = vmatpush1.bf16.msra.mxu1 %v2712_v1  ;;  %v2718_v5 = vld [vmem:[#allocation5 + $0x60] ss:$24 sps:$4 sm:$0xff]   ;;  %v2719_v6 = vld [vmem:[#allocation5 + $0x94] ss:$24 sps:$4 sm:$0xff]   ;;  %v2721_v7 = vld [vmem:[#allocation5 + $0x90] ss:$24 sps:$4 sm:$0xff]  }
  0x5e   : > { %931 = vmatprep.subr.bf16.mxu0 %v2713_v2  ;;  %2598 = vmatprep.subr.bf16.mxu1 %v2713_v2  ;;  %v2722_v8 = vld [vmem:[#allocation5 + $0xc4] ss:$24 sps:$4 sm:$0xff]   ;;  %v2724_v9 = vld [vmem:[#allocation5 + $0xc0] ss:$24 sps:$4 sm:$0xff]   ;;  %v2725_v10 = vld [vmem:[#allocation5 + $0xf4] ss:$24 sps:$4 sm:$0xff]  }
  0x5f   : > { %v2727_v11 = vld [vmem:[#allocation5 + $0xf0] ss:$24 sps:$4 sm:$0xff]   ;;  %v2728_v12 = vld [vmem:[#allocation5 + $0x124] ss:$24 sps:$4 sm:$0xff]   ;;  %v2730_v18 = vld [vmem:[#allocation5 + $0x120] ss:$24 sps:$4 sm:$0xff]  }
  0x60   : > { %v226_v13 = vld [vmem:[%s3185_s6 + $0x8] sm:$0xff]  ;;  %v228_v14 = vld [vmem:[%s3185_s6 + $0x18] sm:$0xff]  ;;  %v225_v38 = vld [vmem:[%s3185_s6] sm:$0xff]  ;;  %s2629_s24 = smul.u32 768, %s3181_s27  ;;  %s2181_s7 = scalar_lea.sflag [#allocation4], %s3181_s27 }
  0x61   : > { %932 = vmatpush1.bf16.msra.mxu0 %v2715_v3  ;;  %2614 = vmatpush1.bf16.msra.mxu1 %v2715_v3  ;;  %v3197_v15 = vpack.c.bf16 %v228_v14, %v226_v13  ;;  %v258_v16 = vld [vmem:[%s3185_s6 + $0x108] sm:$0xff]  ;;  %v260_v17 = vld [vmem:[%s3185_s6 + $0x118] sm:$0xff]  ;;  %v227_v39 = vld [vmem:[%s3185_s6 + $0x10] sm:$0xff]  ;;  %s2630_s10 = smul.u32 12288, %s2990_s15  ;;  %s3006_s21 = smov [#allocation7]  }
  0x62   : > { %933 = vmatprep.subr.bf16.mxu0 %v2716_v4  ;;  %2599 = vmatprep.subr.bf16.mxu1 %v2716_v4  ;;  %v3201_v19 = vpack.c.bf16 %v260_v17, %v258_v16  ;;  %v2731_v20 = vld [vmem:[#allocation5 + $0x154] ss:$24 sps:$4 sm:$0xff]   ;;  %v2733_v21 = vld [vmem:[#allocation5 + $0x150] ss:$24 sps:$4 sm:$0xff]   ;;  %v2734_v22 = vld [vmem:[#allocation5 + $0x184] ss:$24 sps:$4 sm:$0xff]   ;;  %v3210_v45 = vpack.c.bf16 %v227_v39, %v225_v38 }
  0x63   : > { %961 = vmatprep.mubr.bf16.mxu0 %v3197_v15  ;;  %v2736_v23 = vld [vmem:[#allocation5 + $0x180] ss:$24 sps:$4 sm:$0xff]   ;;  %v2737_v24 = vld [vmem:[#allocation5 + $0x1b4] ss:$24 sps:$4 sm:$0xff]   ;;  %v2739_v25 = vld [vmem:[#allocation5 + $0x1b0] ss:$24 sps:$4 sm:$0xff]   ;;  %s3721_s26 = scalar_lea.hbm %s3779_s3, %s2630_s10 }
  0x64   : > { %1041 = vmatprep.mubr.bf16.mxu1 %v3201_v19  ;;  %v2740_v26 = vld [vmem:[#allocation5 + $0x1e4] ss:$24 sps:$4 sm:$0xff]   ;;  %v2742_v27 = vld [vmem:[#allocation5 + $0x1e0] ss:$24 sps:$4 sm:$0xff]   ;;  %v2743_v28 = vld [vmem:[#allocation5 + $0x214] ss:$24 sps:$4 sm:$0xff]  }
  0x65   : > { %934 = vmatpush1.bf16.msra.mxu0 %v2718_v5  ;;  %2615 = vmatpush1.bf16.msra.mxu1 %v2718_v5  ;;  %v2745_v29 = vld [vmem:[#allocation5 + $0x210] ss:$24 sps:$4 sm:$0xff]   ;;  %v2746_v30 = vld [vmem:[#allocation5 + $0x244] ss:$24 sps:$4 sm:$0xff]   ;;  %v2748_v31 = vld [vmem:[#allocation5 + $0x240] ss:$24 sps:$4 sm:$0xff]  }
  0x66   : > { %935 = vmatprep.subr.bf16.mxu0 %v2719_v6  ;;  %2600 = vmatprep.subr.bf16.mxu1 %v2719_v6  ;;  %v2749_v32 = vld [vmem:[#allocation5 + $0x274] ss:$24 sps:$4 sm:$0xff]   ;;  %v2751_v33 = vld [vmem:[#allocation5 + $0x270] ss:$24 sps:$4 sm:$0xff]   ;;  %v2752_v34 = vld [vmem:[#allocation5 + $0x2a4] ss:$24 sps:$4 sm:$0xff]  }
  0x67   : > { %v2754_v35 = vld [vmem:[#allocation5 + $0x2a0] ss:$24 sps:$4 sm:$0xff]   ;;  %v2755_v36 = vld [vmem:[#allocation5 + $0x2d4] ss:$24 sps:$4 sm:$0xff]   ;;  %v2757_v37 = vld [vmem:[#allocation5 + $0x2d0] ss:$24 sps:$4 sm:$0xff]  }
  0x68   : > { %v257_v40 = vld [vmem:[%s3185_s6 + $0x100] sm:$0xff]  ;;  %v259_v41 = vld [vmem:[%s3185_s6 + $0x110] sm:$0xff]  ;;  %v230_v44 = vld [vmem:[%s3185_s6 + $0x28] sm:$0xff]  ;;  %s3438_s9 = scalar_lea.vmem [#allocation7], %s2629_s24  ;;  %s2916_s19 = sshll.u32 %s3006_s21, 4  ;;  %s2917_s19 = int_to_ptr.vmem [resolvable:$false] %s2916_s19 }
  0x69   : > { %936 = vmatpush1.bf16.msra.mxu0 %v2721_v7  ;;  %2616 = vmatpush1.bf16.msra.mxu1 %v2721_v7  ;;  %v2760_v42 = vld [vmem:[#allocation5 + $0xc] ss:$24 sps:$4 sm:$0xff]   ;;  %v3212_v46 = vpack.c.bf16 %v259_v41, %v257_v40  ;;  %v232_v47 = vld [vmem:[%s3185_s6 + $0x38] sm:$0xff]  ;;  %v2758_v50 = vld [vmem:[#allocation5 + $0x8] ss:$24 sps:$4 sm:$0xff]   ;;  %s2197_s11 = sshll.u32 %s3438_s9, 4  ;;  %s3723_s11 = int_to_ptr.vmem [resolvable:$true] %s2197_s11 }
  0x6a   : > { %937 = vmatprep.subr.bf16.mxu0 %v2722_v8  ;;  %2601 = vmatprep.subr.bf16.mxu1 %v2722_v8  ;;  %v2763_v43 = vld [vmem:[#allocation5 + $0x14] ss:$24 sps:$4 sm:$0xff]   ;;  %v264_v49 = vld [vmem:[%s3185_s6 + $0x138] sm:$0xff]  ;;  %v2761_v51 = vld [vmem:[#allocation5 + $0x10] ss:$24 sps:$4 sm:$0xff]   ;;  %v3217_v56 = vpack.c.bf16 %v232_v47, %v230_v44  ;;  %s2912_s8 = scalar_lea.vmem %s3723_s11, 12288  ;;  %p2919_p12 = scmp.lt.s32.totalorder %s3723_s11, %s2917_s19 }
  0x6b   : > { %v262_v48 = vld [vmem:[%s3185_s6 + $0x128] sm:$0xff]  ;;  %v2766_v52 = vld [vmem:[#allocation5 + $0x3c] ss:$24 sps:$4 sm:$0xff]   ;;  %v2764_v54 = vld [vmem:[#allocation5 + $0x38] ss:$24 sps:$4 sm:$0xff]   ;;  %p2913_p4 = scmp.ne.s32.totalorder %s3723_s11, %s2912_s8  ;;  %s2918_s25 = scalar_lea.vmem %s2917_s19, 24576 }
  0x6c   : > { %v2769_v53 = vld [vmem:[#allocation5 + $0x44] ss:$24 sps:$4 sm:$0xff]   ;;  %v2767_v55 = vld [vmem:[#allocation5 + $0x40] ss:$24 sps:$4 sm:$0xff]   ;;  %v3219_v57 = vpack.c.bf16 %v264_v49, %v262_v48  ;;  %v231_v59 = vld [vmem:[%s3185_s6 + $0x30] sm:$0xff]  ;;  %p2920_p11 = scmp.lt.s32.totalorder %s2918_s25, %s2912_s8 }
  0x6d   : > { %938 = vmatpush1.bf16.msra.mxu0 %v2724_v9  ;;  %2617 = vmatpush1.bf16.msra.mxu1 %v2724_v9  ;;  %v229_v58 = vld [vmem:[%s3185_s6 + $0x20] sm:$0xff]  ;;  %v263_v61 = vld [vmem:[%s3185_s6 + $0x130] sm:$0xff]  ;;  %v234_v0 = vld [vmem:[%s3185_s6 + $0x48] sm:$0xff]  ;;  %p2914_p6 = pnand %p2913_p4, %p3125_p10 }
  0x6e   : > { %939 = vmatprep.subr.bf16.mxu0 %v2725_v10  ;;  %2602 = vmatprep.subr.bf16.mxu1 %v2725_v10  ;;  %v261_v60 = vld [vmem:[%s3185_s6 + $0x120] sm:$0xff]  ;;  %v2775_v63 = vld [vmem:[#allocation5 + $0x74] ss:$24 sps:$4 sm:$0xff]   ;;  %v3230_v1 = vpack.c.bf16 %v231_v59, %v229_v58  ;;  %v236_v3 = vld [vmem:[%s3185_s6 + $0x58] sm:$0xff]  ;;  %p2921_p0 = por %p2920_p11, %p2919_p12 }
  0x6f   : > { %v2772_v62 = vld [vmem:[#allocation5 + $0x6c] ss:$24 sps:$4 sm:$0xff]   ;;  %v3232_v2 = vpack.c.bf16 %v263_v61, %v261_v60  ;;  %v268_v5 = vld [vmem:[%s3185_s6 + $0x158] sm:$0xff]  ;;  %v2770_v6 = vld [vmem:[#allocation5 + $0x68] ss:$24 sps:$4 sm:$0xff]   ;;  %p2915_p8 = pneg %p2914_p6 }
  0x70   : > { %v266_v4 = vld [vmem:[%s3185_s6 + $0x148] sm:$0xff]  ;;  %v2778_v8 = vld [vmem:[#allocation5 + $0x9c] ss:$24 sps:$4 sm:$0xff]   ;;  %v2776_v10 = vld [vmem:[#allocation5 + $0x98] ss:$24 sps:$4 sm:$0xff]  }
  0x71   : > { %940 = vmatpush1.bf16.msra.mxu0 %v2727_v11  ;;  %2618 = vmatpush1.bf16.msra.mxu1 %v2727_v11  ;;  %v2773_v7 = vld [vmem:[#allocation5 + $0x70] ss:$24 sps:$4 sm:$0xff]   ;;  %v2781_v9 = vld [vmem:[#allocation5 + $0xa4] ss:$24 sps:$4 sm:$0xff]   ;;  %v2779_v11 = vld [vmem:[#allocation5 + $0xa0] ss:$24 sps:$4 sm:$0xff]   ;;  %v3239_v13 = vpack.c.bf16 %v268_v5, %v266_v4  ;;  %p2922_p5 = pnand %p2921_p0, %p2915_p8 }
  0x72   : > { %941 = vmatprep.subr.bf16.mxu0 %v2728_v12  ;;  %2603 = vmatprep.subr.bf16.mxu1 %v2728_v12  ;;  %v3237_v12 = vpack.c.bf16 %v236_v3, %v234_v0  ;;  %v233_v14 = vld [vmem:[%s3185_s6 + $0x40] sm:$0xff]  ;;  %v235_v16 = vld [vmem:[%s3185_s6 + $0x50] sm:$0xff]  ;;  %v244_v47 = vld [vmem:[%s3185_s6 + $0x98] sm:$0xff] }
  0x73   : > { %v265_v17 = vld [vmem:[%s3185_s6 + $0x140] sm:$0xff]  ;;  %v271_v39 = vld [vmem:[%s3185_s6 + $0x170] sm:$0xff]  ;;  %v274_v48 = vld [vmem:[%s3185_s6 + $0x188] sm:$0xff] }
  0x74   : > { %v269_v38 = vld [vmem:[%s3185_s6 + $0x160] sm:$0xff]  ;;  %v2799_v41 = vld [vmem:[#allocation5 + $0x134] ss:$24 sps:$4 sm:$0xff]   ;;  %v276_v49 = vld [vmem:[%s3185_s6 + $0x198] sm:$0xff] }
  0x75   : > { %942 = vmatpush1.bf16.msra.mxu0 %v2730_v18  ;;  %2619 = vmatpush1.bf16.msra.mxu1 %v2730_v18  ;;  %v267_v18 = vld [vmem:[%s3185_s6 + $0x150] sm:$0xff]  ;;  %v2796_v40 = vld [vmem:[#allocation5 + $0x12c] ss:$24 sps:$4 sm:$0xff]   ;;  %v3272_v44 = vpack.c.bf16 %v271_v39, %v269_v38  ;;  %v2803_v59 = vld [vmem:[#allocation5 + $0x160] ss:$24 sps:$4 sm:$0xff]  }
  0x76   : > { %943 = vmatprep.subr.bf16.mxu0 %v2731_v20  ;;  %2604 = vmatprep.subr.bf16.mxu1 %v2731_v20  ;;  %v2784_v20 = vld [vmem:[#allocation5 + $0xcc] ss:$24 sps:$4 sm:$0xff]   ;;  %v2800_v58 = vld [vmem:[#allocation5 + $0x158] ss:$24 sps:$4 sm:$0xff]   ;;  %v2818_v38 = vld [vmem:[#allocation5 + $0x1e8] ss:$24 sps:$4 sm:$0xff]  }
  0x77   : > { %v241_v60 = vld [vmem:[%s3185_s6 + $0x80] sm:$0xff]  ;;  %v243_v61 = vld [vmem:[%s3185_s6 + $0x90] sm:$0xff]  ;;  %v246_v4 = vld [vmem:[%s3185_s6 + $0xa8] sm:$0xff] }
  0x78   : > { %v2808_v0 = vld [vmem:[#allocation5 + $0x18c] ss:$24 sps:$4 sm:$0xff]   ;;  %v3290_v5 = vpack.c.bf16 %v243_v61, %v241_v60  ;;  %v2821_v39 = vld [vmem:[#allocation5 + $0x1f0] ss:$24 sps:$4 sm:$0xff]  }
  0x79   : > { %944 = vmatpush1.bf16.msra.mxu0 %v2733_v21  ;;  %2620 = vmatpush1.bf16.msra.mxu1 %v2733_v21  ;;  %v2787_v21 = vld [vmem:[#allocation5 + $0xd4] ss:$24 sps:$4 sm:$0xff]  }
  0x7a   : > { %945 = vmatprep.subr.bf16.mxu0 %v2734_v22  ;;  %2605 = vmatprep.subr.bf16.mxu1 %v2734_v22  ;;  %v238_v22 = vld [vmem:[%s3185_s6 + $0x68] sm:$0xff] }
  0x7b   : > { %v2811_v3 = vld [vmem:[#allocation5 + $0x194] ss:$24 sps:$4 sm:$0xff]  }
  0x7c   : > { %v254_v60 = vld [vmem:[%s3185_s6 + $0xe8] sm:$0xff] }
  0x7d   : > { %946 = vmatpush1.bf16.msra.mxu0 %v2736_v23  ;;  %2621 = vmatpush1.bf16.msra.mxu1 %v2736_v23  ;;  %v3250_v23 = vpack.c.bf16 %v235_v16, %v233_v14  ;;  %v2814_v14 = vld [vmem:[#allocation5 + $0x1bc] ss:$24 sps:$4 sm:$0xff]  }
  0x7e   : > { %947 = vmatprep.subr.bf16.mxu0 %v2737_v24  ;;  %2606 = vmatprep.subr.bf16.mxu1 %v2737_v24  ;;  %v3252_v24 = vpack.c.bf16 %v267_v18, %v265_v17  ;;  %v2817_v16 = vld [vmem:[#allocation5 + $0x1c4] ss:$24 sps:$4 sm:$0xff]  }
  0x81   : > { %948 = vmatpush1.bf16.msra.mxu0 %v2739_v25  ;;  %2622 = vmatpush1.bf16.msra.mxu1 %v2739_v25  ;;  %v240_v25 = vld [vmem:[%s3185_s6 + $0x78] sm:$0xff] }
  0x82   : > { %949 = vmatprep.subr.bf16.mxu0 %v2740_v26  ;;  %2607 = vmatprep.subr.bf16.mxu1 %v2740_v26  ;;  %v270_v26 = vld [vmem:[%s3185_s6 + $0x168] sm:$0xff] }
  0x85   : > { %950 = vmatpush1.bf16.msra.mxu0 %v2742_v27  ;;  %2623 = vmatpush1.bf16.msra.mxu1 %v2742_v27  ;;  %v272_v27 = vld [vmem:[%s3185_s6 + $0x178] sm:$0xff] }
  0x86   : > { %951 = vmatprep.subr.bf16.mxu0 %v2743_v28  ;;  %2608 = vmatprep.subr.bf16.mxu1 %v2743_v28  ;;  %v2782_v28 = vld [vmem:[#allocation5 + $0xc8] ss:$24 sps:$4 sm:$0xff]  }
  0x89   : > { %952 = vmatpush1.bf16.msra.mxu0 %v2745_v29  ;;  %2624 = vmatpush1.bf16.msra.mxu1 %v2745_v29  ;;  %v2785_v29 = vld [vmem:[#allocation5 + $0xd0] ss:$24 sps:$4 sm:$0xff]  }
  0x8a   : > { %953 = vmatprep.subr.bf16.mxu0 %v2746_v30  ;;  %2609 = vmatprep.subr.bf16.mxu1 %v2746_v30  ;;  %v2790_v30 = vld [vmem:[#allocation5 + $0xfc] ss:$24 sps:$4 sm:$0xff]  }
  0x8d   : > { %954 = vmatpush1.bf16.msra.mxu0 %v2748_v31  ;;  %2625 = vmatpush1.bf16.msra.mxu1 %v2748_v31  ;;  %v2793_v31 = vld [vmem:[#allocation5 + $0x104] ss:$24 sps:$4 sm:$0xff]  }
  0x8e   : > { %955 = vmatprep.subr.bf16.mxu0 %v2749_v32  ;;  %2610 = vmatprep.subr.bf16.mxu1 %v2749_v32  ;;  %v2788_v32 = vld [vmem:[#allocation5 + $0xf8] ss:$24 sps:$4 sm:$0xff]  }
  0x91   : > { %956 = vmatpush1.bf16.msra.mxu0 %v2751_v33  ;;  %2626 = vmatpush1.bf16.msra.mxu1 %v2751_v33  ;;  %v2791_v33 = vld [vmem:[#allocation5 + $0x100] ss:$24 sps:$4 sm:$0xff]  }
  0x92   : > { %957 = vmatprep.subr.bf16.mxu0 %v2752_v34  ;;  %2611 = vmatprep.subr.bf16.mxu1 %v2752_v34  ;;  %v3257_v34 = vpack.c.bf16 %v240_v25, %v238_v22  ;;  %v245_v22 = vld [vmem:[%s3185_s6 + $0xa0] sm:$0xff]  ;;  %v247_v25 = vld [vmem:[%s3185_s6 + $0xb0] sm:$0xff] }
  0x95   : > { %958 = vmatpush1.bf16.msra.mxu0 %v2754_v35  ;;  %2627 = vmatpush1.bf16.msra.mxu1 %v2754_v35  ;;  %v3259_v35 = vpack.c.bf16 %v272_v27, %v270_v26  ;;  %v277_v26 = vld [vmem:[%s3185_s6 + $0x1a0] sm:$0xff]  ;;  %v279_v27 = vld [vmem:[%s3185_s6 + $0x1b0] sm:$0xff] }
  0x96   : > { %959 = vmatprep.subr.bf16.mxu0 %v2755_v36  ;;  %2612 = vmatprep.subr.bf16.mxu1 %v2755_v36  ;;  %v237_v36 = vld [vmem:[%s3185_s6 + $0x60] sm:$0xff] }
  0x99   : > { %960 = vmatpush1.bf16.msra.mxu0 %v2757_v37  ;;  %2628 = vmatpush1.bf16.msra.mxu1 %v2757_v37  ;;  %v239_v37 = vld [vmem:[%s3185_s6 + $0x70] sm:$0xff] }
  0x9a   : > { %1122 = vmatprep.subr.bf16.mxu1 %v2760_v42  ;;  %1315 = vmatprep.subr.bf16.mxu0 %v2763_v43  ;;  %v242_v42 = vld [vmem:[%s3185_s6 + $0x88] sm:$0xff]  ;;  %v3270_v43 = vpack.c.bf16 %v239_v37, %v237_v36  ;;  %v284_v37 = vld [vmem:[%s3185_s6 + $0x1d8] sm:$0xff] }
  0x9b   : > { %v282_v36 = vld [vmem:[%s3185_s6 + $0x1c8] sm:$0xff] }
  0x9c   : > { %962 = vmatmul.mubr.bf16.vlgmr.msra.gmra.mrb[0].mxu0 %v3210_v45  ;;  %1042 = vmatmul.mubr.bf16.vlgmr.msra.gmra.mrb[0].mxu1 %v3212_v46 }
  0x9d   : > { %1123 = vmatpush1.bf16.msra.mxu1 %v2758_v50  ;;  %1316 = vmatpush1.bf16.msra.mxu0 %v2761_v51  ;;  %v2794_v50 = vld [vmem:[#allocation5 + $0x128] ss:$24 sps:$4 sm:$0xff]  }
  0x9e   : > { %1124 = vmatprep.subr.bf16.mxu1 %v2766_v52  ;;  %1317 = vmatprep.subr.bf16.mxu0 %v2769_v53  ;;  %v2797_v51 = vld [vmem:[#allocation5 + $0x130] ss:$24 sps:$4 sm:$0xff]   ;;  %v2802_v52 = vld [vmem:[#allocation5 + $0x15c] ss:$24 sps:$4 sm:$0xff]  }
  0x9f   : > { %971 = vmatprep.mubr.bf16.mxu0 %v3217_v56  ;;  %1051 = vmatprep.mubr.bf16.mxu1 %v3219_v57  ;;  %v2805_v53 = vld [vmem:[#allocation5 + $0x164] ss:$24 sps:$4 sm:$0xff]  }
  0xa1   : > { %1125 = vmatpush1.bf16.msra.mxu1 %v2764_v54  ;;  %1318 = vmatpush1.bf16.msra.mxu0 %v2767_v55  ;;  %v3277_v54 = vpack.c.bf16 %v244_v47, %v242_v42  ;;  %v3279_v55 = vpack.c.bf16 %v276_v49, %v274_v48  ;;  %v3319_v47 = vpack.c.bf16 %v284_v37, %v282_v36  ;;  %v2824_v48 = vld [vmem:[#allocation5 + $0x218] ss:$24 sps:$4 sm:$0xff]   ;;  %v2850_v36 = vld [vmem:[#allocation5 + $0x2dc] ss:$24 sps:$4 sm:$0xff]  }
  0xa2   : > { %1126 = vmatprep.subr.bf16.mxu1 %v2772_v62  ;;  %1319 = vmatprep.subr.bf16.mxu0 %v2775_v63  ;;  %v273_v62 = vld [vmem:[%s3185_s6 + $0x180] sm:$0xff]  ;;  %v275_v63 = vld [vmem:[%s3185_s6 + $0x190] sm:$0xff] }
  0xa3   : > { %v2827_v49 = vld [vmem:[#allocation5 + $0x220] ss:$24 sps:$4 sm:$0xff]   ;;  %v2853_v37 = vld [vmem:[#allocation5 + $0x2e4] ss:$24 sps:$4 sm:$0xff]  }
  0xa4   : > { %972 = vmatmul.mubr.bf16.gmra.mrb[4].mxu0 %v3230_v1  ;;  %1052 = vmatmul.mubr.bf16.gmra.mrb[4].mxu1 %v3232_v2 }
  0xa5   : > { %1127 = vmatpush1.bf16.msra.mxu1 %v2770_v6  ;;  %1320 = vmatpush1.bf16.msra.mxu0 %v2773_v7  ;;  %v3292_v6 = vpack.c.bf16 %v275_v63, %v273_v62  ;;  %v248_v7 = vld [vmem:[%s3185_s6 + $0xb8] sm:$0xff] }
  0xa6   : > { %1128 = vmatprep.subr.bf16.mxu1 %v2778_v8  ;;  %1321 = vmatprep.subr.bf16.mxu0 %v2781_v9  ;;  %v278_v8 = vld [vmem:[%s3185_s6 + $0x1a8] sm:$0xff]  ;;  %v280_v9 = vld [vmem:[%s3185_s6 + $0x1b8] sm:$0xff]  ;;  %v3297_v17 = vpack.c.bf16 %v248_v7, %v246_v4 }
  0xa7   : > { %981 = vmatprep.mubr.bf16.mxu0 %v3237_v12  ;;  %1061 = vmatprep.mubr.bf16.mxu1 %v3239_v13  ;;  %v3299_v18 = vpack.c.bf16 %v280_v9, %v278_v8  ;;  %v256_v63 = vld [vmem:[%s3185_s6 + $0xf8] sm:$0xff]  ;;  %v2830_v4 = vld [vmem:[#allocation5 + $0x248] ss:$24 sps:$4 sm:$0xff]  }
  0xa8   : > { %v2833_v7 = vld [vmem:[#allocation5 + $0x250] ss:$24 sps:$4 sm:$0xff]   ;;  %v2838_v8 = vld [vmem:[#allocation5 + $0x27c] ss:$24 sps:$4 sm:$0xff]  }
  0xa9   : > { %1129 = vmatpush1.bf16.msra.mxu1 %v2776_v10  ;;  %1322 = vmatpush1.bf16.msra.mxu0 %v2779_v11  ;;  %v2806_v10 = vld [vmem:[#allocation5 + $0x188] ss:$24 sps:$4 sm:$0xff]   ;;  %v2841_v9 = vld [vmem:[#allocation5 + $0x284] ss:$24 sps:$4 sm:$0xff]  }
  0xaa   : > { %1130 = vmatprep.subr.bf16.mxu1 %v2784_v20  ;;  %1323 = vmatprep.subr.bf16.mxu0 %v2787_v21  ;;  %v2809_v11 = vld [vmem:[#allocation5 + $0x190] ss:$24 sps:$4 sm:$0xff]   ;;  %v2815_v21 = vld [vmem:[#allocation5 + $0x1c0] ss:$24 sps:$4 sm:$0xff]  }
  0xab   : > { %v2812_v20 = vld [vmem:[#allocation5 + $0x1b8] ss:$24 sps:$4 sm:$0xff]  }
  0xac   : > { %982 = vmatmul.mubr.bf16.gmra.mrb[8].mxu0 %v3250_v23  ;;  %1062 = vmatmul.mubr.bf16.gmra.mrb[8].mxu1 %v3252_v24 }
  0xad   : > { %1131 = vmatpush1.bf16.msra.mxu1 %v2782_v28  ;;  %1324 = vmatpush1.bf16.msra.mxu0 %v2785_v29  ;;  %v2820_v28 = vld [vmem:[#allocation5 + $0x1ec] ss:$24 sps:$4 sm:$0xff]  }
  0xae   : > { %1132 = vmatprep.subr.bf16.mxu1 %v2790_v30  ;;  %1325 = vmatprep.subr.bf16.mxu0 %v2793_v31  ;;  %v2823_v29 = vld [vmem:[#allocation5 + $0x1f4] ss:$24 sps:$4 sm:$0xff]   ;;  %v3310_v31 = vpack.c.bf16 %v247_v25, %v245_v22  ;;  %v285_v22 = vld [vmem:[%s3185_s6 + $0x1e0] sm:$0xff] }
  0xaf   : > { %991 = vmatprep.mubr.bf16.mxu0 %v3257_v34  ;;  %1071 = vmatprep.mubr.bf16.mxu1 %v3259_v35  ;;  %v250_v30 = vld [vmem:[%s3185_s6 + $0xc8] sm:$0xff]  ;;  %v287_v25 = vld [vmem:[%s3185_s6 + $0x1f0] sm:$0xff] }
  0xb1   : > { %1133 = vmatpush1.bf16.msra.mxu1 %v2788_v32  ;;  %1326 = vmatpush1.bf16.msra.mxu0 %v2791_v33  ;;  %v3312_v32 = vpack.c.bf16 %v279_v27, %v277_v26  ;;  %v252_v33 = vld [vmem:[%s3185_s6 + $0xd8] sm:$0xff]  ;;  %v2844_v26 = vld [vmem:[#allocation5 + $0x2ac] ss:$24 sps:$4 sm:$0xff]  }
  0xb2   : > { %1134 = vmatprep.subr.bf16.mxu1 %v2796_v40  ;;  %1327 = vmatprep.subr.bf16.mxu0 %v2799_v41  ;;  %v2826_v40 = vld [vmem:[#allocation5 + $0x21c] ss:$24 sps:$4 sm:$0xff]   ;;  %v3317_v42 = vpack.c.bf16 %v252_v33, %v250_v30  ;;  %v2842_v30 = vld [vmem:[#allocation5 + $0x2a8] ss:$24 sps:$4 sm:$0xff]  }
  0xb3   : > { %v2829_v41 = vld [vmem:[#allocation5 + $0x224] ss:$24 sps:$4 sm:$0xff]   ;;  %v2847_v27 = vld [vmem:[#allocation5 + $0x2b4] ss:$24 sps:$4 sm:$0xff]   ;;  %v2845_v33 = vld [vmem:[#allocation5 + $0x2b0] ss:$24 sps:$4 sm:$0xff]  }
  0xb4   : > { %992 = vmatmul.mubr.bf16.gmra.mrb[12].mxu0 %v3270_v43  ;;  %1072 = vmatmul.mubr.bf16.gmra.mrb[12].mxu1 %v3272_v44 }
  0xb5   : > { %1135 = vmatpush1.bf16.msra.mxu1 %v2794_v50  ;;  %1328 = vmatpush1.bf16.msra.mxu0 %v2797_v51  ;;  %v249_v50 = vld [vmem:[%s3185_s6 + $0xc0] sm:$0xff]  ;;  %v251_v51 = vld [vmem:[%s3185_s6 + $0xd0] sm:$0xff] }
  0xb6   : > { %1136 = vmatprep.subr.bf16.mxu1 %v2802_v52  ;;  %1329 = vmatprep.subr.bf16.mxu0 %v2805_v53  ;;  %v281_v52 = vld [vmem:[%s3185_s6 + $0x1c0] sm:$0xff]  ;;  %v283_v53 = vld [vmem:[%s3185_s6 + $0x1d0] sm:$0xff]  ;;  %v3330_v61 = vpack.c.bf16 %v251_v51, %v249_v50 }
  0xb7   : > { %1001 = vmatprep.mubr.bf16.mxu0 %v3277_v54  ;;  %1081 = vmatprep.mubr.bf16.mxu1 %v3279_v55  ;;  %v3332_v62 = vpack.c.bf16 %v283_v53, %v281_v52 }
  0xb9   : > { %1137 = vmatpush1.bf16.msra.mxu1 %v2800_v58  ;;  %1330 = vmatpush1.bf16.msra.mxu0 %v2803_v59  ;;  %v2832_v58 = vld [vmem:[#allocation5 + $0x24c] ss:$24 sps:$4 sm:$0xff]  }
  0xba   : > { %1138 = vmatprep.subr.bf16.mxu1 %v2808_v0  ;;  %1331 = vmatprep.subr.bf16.mxu0 %v2811_v3  ;;  %v2835_v59 = vld [vmem:[#allocation5 + $0x254] ss:$24 sps:$4 sm:$0xff]   ;;  %v288_v3 = vld [vmem:[%s3185_s6 + $0x1f8] sm:$0xff] }
  0xbb   : > { %v286_v0 = vld [vmem:[%s3185_s6 + $0x1e8] sm:$0xff] }
  0xbc   : > { %1002 = vmatmul.mubr.bf16.gmra.mrb[16].mxu0 %v3290_v5  ;;  %1082 = vmatmul.mubr.bf16.gmra.mrb[16].mxu1 %v3292_v6 }
  0xbd   : > { %1139 = vmatpush1.bf16.msra.mxu1 %v2806_v10  ;;  %1332 = vmatpush1.bf16.msra.mxu0 %v2809_v11  ;;  %v3337_v10 = vpack.c.bf16 %v256_v63, %v254_v60  ;;  %v3339_v11 = vpack.c.bf16 %v288_v3, %v286_v0 }
  0xbe   : > { %1140 = vmatprep.subr.bf16.mxu1 %v2814_v14  ;;  %1333 = vmatprep.subr.bf16.mxu0 %v2817_v16  ;;  %v2836_v14 = vld [vmem:[#allocation5 + $0x278] ss:$24 sps:$4 sm:$0xff]  }
  0xbf   : > { %1011 = vmatprep.mubr.bf16.mxu0 %v3297_v17  ;;  %1091 = vmatprep.mubr.bf16.mxu1 %v3299_v18  ;;  %v2839_v16 = vld [vmem:[#allocation5 + $0x280] ss:$24 sps:$4 sm:$0xff]  }
  0xc1   : > { %1141 = vmatpush1.bf16.msra.mxu1 %v2812_v20  ;;  %1334 = vmatpush1.bf16.msra.mxu0 %v2815_v21  ;;  %v253_v20 = vld [vmem:[%s3185_s6 + $0xe0] sm:$0xff]  ;;  %v255_v21 = vld [vmem:[%s3185_s6 + $0xf0] sm:$0xff] }
  0xc2   : > { %1142 = vmatprep.subr.bf16.mxu1 %v2820_v28  ;;  %1335 = vmatprep.subr.bf16.mxu0 %v2823_v29  ;;  %v303_v28 = vpack.c.bf16 %v255_v21, %v253_v20  ;;  %v3349_v29 = vpack.c.bf16 %v287_v25, %v285_v22 }
  0xc4   : > { %1012 = vmatmul.mubr.bf16.gmra.mrb[20].mxu0 %v3310_v31  ;;  %1092 = vmatmul.mubr.bf16.gmra.mrb[20].mxu1 %v3312_v32 }
  0xc5   : > { %1143 = vmatpush1.bf16.msra.mxu1 %v2818_v38  ;;  %1336 = vmatpush1.bf16.msra.mxu0 %v2821_v39  ;;  %v2848_v38 = vld [vmem:[#allocation5 + $0x2d8] ss:$24 sps:$4 sm:$0xff]  }
  0xc6   : > { %1144 = vmatprep.subr.bf16.mxu1 %v2826_v40  ;;  %1337 = vmatprep.subr.bf16.mxu0 %v2829_v41  ;;  %v2851_v39 = vld [vmem:[#allocation5 + $0x2e0] ss:$24 sps:$4 sm:$0xff]  }
  0xc7   : > { %1021 = vmatprep.mubr.bf16.mxu0 %v3317_v42  ;;  %1101 = vmatprep.mubr.bf16.mxu1 %v3319_v47 }
  0xc9   : > { %1145 = vmatpush1.bf16.msra.mxu1 %v2824_v48  ;;  %1338 = vmatpush1.bf16.msra.mxu0 %v2827_v49 }
  0xca   : > { %1146 = vmatprep.subr.bf16.mxu1 %v2832_v58  ;;  %1339 = vmatprep.subr.bf16.mxu0 %v2835_v59 }
  0xcc   : > { %1022 = vmatmul.mubr.bf16.gmra.mrb[24].mxu0 %v3330_v61  ;;  %1102 = vmatmul.mubr.bf16.gmra.mrb[24].mxu1 %v3332_v62 }
  0xcd   : > { %1147 = vmatpush1.bf16.msra.mxu1 %v2830_v4  ;;  %1340 = vmatpush1.bf16.msra.mxu0 %v2833_v7 }
  0xce   : > { %1148 = vmatprep.subr.bf16.mxu1 %v2838_v8  ;;  %1341 = vmatprep.subr.bf16.mxu0 %v2841_v9 }
  0xcf   : > { %1031 = vmatprep.mubr.bf16.mxu0 %v3337_v10  ;;  %1111 = vmatprep.mubr.bf16.mxu1 %v3339_v11 }
  0xd1   : > { %1149 = vmatpush1.bf16.msra.mxu1 %v2836_v14  ;;  %1342 = vmatpush1.bf16.msra.mxu0 %v2839_v16 }
  0xd2   : > { %1150 = vmatprep.subr.bf16.mxu1 %v2844_v26  ;;  %1343 = vmatprep.subr.bf16.mxu0 %v2847_v27 }
  0xd4   : > { %1032 = vmatmul.mubr.bf16.gmra.mrb[28].mxu0 %v303_v28  ;;  %1112 = vmatmul.mubr.bf16.gmra.mrb[28].mxu1 %v3349_v29 }
  0xd5   : > { %1151 = vmatpush1.bf16.msra.mxu1 %v2842_v30  ;;  %1344 = vmatpush1.bf16.msra.mxu0 %v2845_v33 }
  0xd6   : > { %1152 = vmatprep.subr.bf16.mxu1 %v2850_v36  ;;  %1345 = vmatprep.subr.bf16.mxu0 %v2853_v37 }
  0xd7   : > { %1154 = vmatprep.mubr.bf16.mxu1 %v3197_v15  ;;  %1347 = vmatprep.mubr.bf16.mxu0 %v3197_v15  ;;  %v419_v15 = vlaneseq }
  0xd9   : > { %1153 = vmatpush1.bf16.msra.mxu1 %v2848_v38  ;;  %1346 = vmatpush1.bf16.msra.mxu0 %v2851_v39 }
  0xdc   : > { %1155 = vmatmul.mubr.bf16.vlgmr.msra.gmra.mrb[32].mxu1 %v3210_v45  ;;  %1348 = vmatmul.mubr.bf16.vlgmr.msra.gmra.mrb[32].mxu0 %v3210_v45  ;;  %v420_v45 = vshrl.u32 %v419_v15, 7 }
  0xdd   : > { %1164 = vmatprep.mubr.bf16.mxu1 %v3217_v56  ;;  %1357 = vmatprep.mubr.bf16.mxu0 %v3217_v56  ;;  %v417_v56 = vld [vmem:[%s3778_s2] sm:$0x3f] }
  0xe4   : > { %1165 = vmatmul.mubr.bf16.gmra.mrb[36].mxu1 %v3230_v1  ;;  %1358 = vmatmul.mubr.bf16.gmra.mrb[36].mxu0 %v3230_v1  ;;  %v441_v1 = vsub.s32 5, %v420_v45 }
  0xe5   : > { %1174 = vmatprep.mubr.bf16.mxu1 %v3237_v12  ;;  %1367 = vmatprep.mubr.bf16.mxu0 %v3237_v12 }
  0xec   : > { %1175 = vmatmul.mubr.bf16.gmra.mrb[40].mxu1 %v3250_v23  ;;  %1368 = vmatmul.mubr.bf16.gmra.mrb[40].mxu0 %v3250_v23  ;;  %v3405_v23 = vrot.slane %v417_v56, %v441_v1 }
  0xed   : > { %1184 = vmatprep.mubr.bf16.mxu1 %v3257_v34  ;;  %1377 = vmatprep.mubr.bf16.mxu0 %v3257_v34  ;;  %v425_v34 = vsub.s32 1, %v420_v45 }
  0xf4   : > { %1185 = vmatmul.mubr.bf16.gmra.mrb[44].mxu1 %v3270_v43  ;;  %1378 = vmatmul.mubr.bf16.gmra.mrb[44].mxu0 %v3270_v43  ;;  %v3427_v43 = vrot.slane %v417_v56, %v425_v34 }
  0xf5   : > { %1194 = vmatprep.mubr.bf16.mxu1 %v3277_v54  ;;  %1387 = vmatprep.mubr.bf16.mxu0 %v3277_v54 }
  0xfc   : > { %1195 = vmatmul.mubr.bf16.gmra.mrb[48].mxu1 %v3290_v5  ;;  %1388 = vmatmul.mubr.bf16.gmra.mrb[48].mxu0 %v3290_v5 }
  0xfd   : > { %1204 = vmatprep.mubr.bf16.mxu1 %v3297_v17  ;;  %1397 = vmatprep.mubr.bf16.mxu0 %v3297_v17 }
 0x104   : > { %1205 = vmatmul.mubr.bf16.gmra.mrb[52].mxu1 %v3310_v31  ;;  %1398 = vmatmul.mubr.bf16.gmra.mrb[52].mxu0 %v3310_v31 }
 0x105   : > { %1214 = vmatprep.mubr.bf16.mxu1 %v3317_v42  ;;  %1407 = vmatprep.mubr.bf16.mxu0 %v3317_v42 }
 0x10c   : > { %1215 = vmatmul.mubr.bf16.gmra.mrb[56].mxu1 %v3330_v61  ;;  %1408 = vmatmul.mubr.bf16.gmra.mrb[56].mxu0 %v3330_v61 }
 0x10d   : > { %1224 = vmatprep.mubr.bf16.mxu1 %v3337_v10  ;;  %1417 = vmatprep.mubr.bf16.mxu0 %v3337_v10 }
 0x114   : > { %1225 = vmatmul.mubr.bf16.gmra.mrb[60].mxu1 %v303_v28  ;;  %1418 = vmatmul.mubr.bf16.gmra.mrb[60].mxu0 %v303_v28 }
 0x115   : > { %1234 = vmatprep.mubr.bf16.mxu1 %v3201_v19  ;;  %1427 = vmatprep.mubr.bf16.mxu0 %v3201_v19  ;;  %v429_v19 = vsub.s32 2, %v420_v45 }
 0x11c   : > { %1235 = vmatmul.mubr.bf16.gmra.mrb[64].mxu1 %v3212_v46  ;;  %1428 = vmatmul.mubr.bf16.gmra.mrb[64].mxu0 %v3212_v46  ;;  %v437_v46 = vsub.s32 4, %v420_v45 }
 0x11d   : > { %1244 = vmatprep.mubr.bf16.mxu1 %v3219_v57  ;;  %1437 = vmatprep.mubr.bf16.mxu0 %v3219_v57  ;;  %v433_v57 = vsub.s32 3, %v420_v45 }
 0x11e   : > { %v3401_v12 = vrot.slane %v417_v56, %v437_v46 }
 0x124   : > { %1245 = vmatmul.mubr.bf16.gmra.mrb[68].mxu1 %v3232_v2  ;;  %1438 = vmatmul.mubr.bf16.gmra.mrb[68].mxu0 %v3232_v2  ;;  %v3399_v2 = vrot.slane %v417_v56, %v429_v19 }
 0x125   : > { %1254 = vmatprep.mubr.bf16.mxu1 %v3239_v13  ;;  %1447 = vmatprep.mubr.bf16.mxu0 %v3239_v13  ;;  %v3403_v13 = vrot.slane %v417_v56, %v433_v57 }
 0x12c   : > { %1255 = vmatmul.mubr.bf16.gmra.mrb[72].mxu1 %v3252_v24  ;;  %1448 = vmatmul.mubr.bf16.gmra.mrb[72].mxu0 %v3252_v24  ;;  %v421_v24 = vsub.s32 0, %v420_v45 }
 0x12d   : > { %1264 = vmatprep.mubr.bf16.mxu1 %v3259_v35  ;;  %1457 = vmatprep.mubr.bf16.mxu0 %v3259_v35 }
 0x12e   : > { %v3425_v35 = vrot.slane %v417_v56, %v421_v24 }
 0x134   : > { %1265 = vmatmul.mubr.bf16.gmra.mrb[76].mxu1 %v3272_v44  ;;  %1458 = vmatmul.mubr.bf16.gmra.mrb[76].mxu0 %v3272_v44 }
 0x135   : > { %1274 = vmatprep.mubr.bf16.mxu1 %v3279_v55  ;;  %1467 = vmatprep.mubr.bf16.mxu0 %v3279_v55 }
 0x13c   : > { %1275 = vmatmul.mubr.bf16.gmra.mrb[80].mxu1 %v3292_v6  ;;  %1468 = vmatmul.mubr.bf16.gmra.mrb[80].mxu0 %v3292_v6 }
 0x13d   : > { %1284 = vmatprep.mubr.bf16.mxu1 %v3299_v18  ;;  %1477 = vmatprep.mubr.bf16.mxu0 %v3299_v18 }
 0x144   : > { %1285 = vmatmul.mubr.bf16.gmra.mrb[84].mxu1 %v3312_v32  ;;  %1478 = vmatmul.mubr.bf16.gmra.mrb[84].mxu0 %v3312_v32 }
 0x145   : > { %1294 = vmatprep.mubr.bf16.mxu1 %v3319_v47  ;;  %1487 = vmatprep.mubr.bf16.mxu0 %v3319_v47 }
 0x14c   : > { %1295 = vmatmul.mubr.bf16.gmra.mrb[88].mxu1 %v3332_v62  ;;  %1488 = vmatmul.mubr.bf16.gmra.mrb[88].mxu0 %v3332_v62 }
 0x14d   : > { %1304 = vmatprep.mubr.bf16.mxu1 %v3339_v11  ;;  %1497 = vmatprep.mubr.bf16.mxu0 %v3339_v11 }
 0x154   : > { %1305 = vmatmul.mubr.bf16.gmra.mrb[92].mxu1 %v3349_v29  ;;  %1498 = vmatmul.mubr.bf16.gmra.mrb[92].mxu0 %v3349_v29 }
 0x16f   : > { %v963_v44 = vpop.f32.mrb[0].mxu0  ;;  %v1043_v54 = vpop.f32.mrb[0].mxu1 }
 0x170   : > { %v964_v55 = vadd.f32 %v963_v44, %v3425_v35  ;;  %v1044_v5 = vadd.f32 %v1043_v54, %v3425_v35  ;;  %v965_v6 = vpop.f32.mrb[1].mxu0  ;;  %v1045_v17 = vpop.f32.mrb[1].mxu1 }
 0x171   : > { %v966_v18 = vadd.f32 %v965_v6, %v3427_v43  ;;  %v1046_v31 = vadd.f32 %v1045_v17, %v3427_v43  ;;  %v967_v32 = vpop.f32.mrb[2].mxu0  ;;  %v1047_v40 = vpop.f32.mrb[2].mxu1 }
 0x172   : > { %v968_v41 = vadd.f32 %v967_v32, %v3425_v35  ;;  %v1048_v42 = vadd.f32 %v1047_v40, %v3425_v35  ;;  %v969_v47 = vpop.f32.mrb[3].mxu0  ;;  %v1049_v48 = vpop.f32.mrb[3].mxu1 }
 0x173   : > { %v2501_v49 = vpack.c.bf16 %v966_v18, %v964_v55  ;;  %v2549_v50 = vpack.c.bf16 %v1046_v31, %v1044_v5  ;;  %v970_v51 = vadd.f32 %v969_v47, %v3427_v43  ;;  %v1050_v52 = vadd.f32 %v1049_v48, %v3427_v43 }
 0x175   : > { %2084 = vst [vmem:[%s3438_s9] sm:$0xff] %v2501_v49  ;;  %2132 = vst [vmem:[%s3438_s9 + $0x180] sm:$0xff] %v2549_v50  ;;  %v2504_v53 = vpack.c.bf16 %v970_v51, %v968_v41  ;;  %v2552_v58 = vpack.c.bf16 %v1050_v52, %v1048_v42 }
 0x177   : > { %2087 = vst [vmem:[%s3438_s9 + $0x18] sm:$0xff] %v2504_v53  ;;  %2135 = vst [vmem:[%s3438_s9 + $0x198] sm:$0xff] %v2552_v58  ;;  %v973_v59 = vpop.f32.mrb[4].mxu0  ;;  %v1053_v60 = vpop.f32.mrb[4].mxu1 }
 0x178   : > { %v974_v61 = vadd.f32 %v973_v59, %v3425_v35  ;;  %v1054_v62 = vadd.f32 %v1053_v60, %v3425_v35  ;;  %v975_v63 = vpop.f32.mrb[5].mxu0  ;;  %v1055_v0 = vpop.f32.mrb[5].mxu1 }
 0x179   : > { %v976_v3 = vadd.f32 %v975_v63, %v3427_v43  ;;  %v1056_v4 = vadd.f32 %v1055_v0, %v3427_v43  ;;  %v977_v7 = vpop.f32.mrb[6].mxu0  ;;  %v1057_v8 = vpop.f32.mrb[6].mxu1 }
 0x17a   : > { %v978_v9 = vadd.f32 %v977_v7, %v3425_v35  ;;  %v1058_v10 = vadd.f32 %v1057_v8, %v3425_v35  ;;  %v979_v11 = vpop.f32.mrb[7].mxu0  ;;  %v1059_v14 = vpop.f32.mrb[7].mxu1 }
 0x17b   : > { %v2507_v16 = vpack.c.bf16 %v976_v3, %v974_v61  ;;  %v2555_v20 = vpack.c.bf16 %v1056_v4, %v1054_v62  ;;  %v980_v21 = vadd.f32 %v979_v11, %v3427_v43  ;;  %v1060_v22 = vadd.f32 %v1059_v14, %v3427_v43 }
 0x17d   : > { %2090 = vst [vmem:[%s3438_s9 + $0x30] sm:$0xff] %v2507_v16  ;;  %2138 = vst [vmem:[%s3438_s9 + $0x1b0] sm:$0xff] %v2555_v20  ;;  %v2510_v25 = vpack.c.bf16 %v980_v21, %v978_v9  ;;  %v2558_v26 = vpack.c.bf16 %v1060_v22, %v1058_v10 }
 0x17f   : > { %2093 = vst [vmem:[%s3438_s9 + $0x48] sm:$0xff] %v2510_v25  ;;  %2141 = vst [vmem:[%s3438_s9 + $0x1c8] sm:$0xff] %v2558_v26  ;;  %v983_v27 = vpop.f32.mrb[8].mxu0  ;;  %v1063_v28 = vpop.f32.mrb[8].mxu1 }
 0x180   : > { %v984_v29 = vadd.f32 %v983_v27, %v3425_v35  ;;  %v1064_v30 = vadd.f32 %v1063_v28, %v3425_v35  ;;  %v985_v33 = vpop.f32.mrb[9].mxu0  ;;  %v1065_v36 = vpop.f32.mrb[9].mxu1 }
 0x181   : > { %v986_v37 = vadd.f32 %v985_v33, %v3427_v43  ;;  %v1066_v38 = vadd.f32 %v1065_v36, %v3427_v43  ;;  %v987_v39 = vpop.f32.mrb[10].mxu0  ;;  %v1067_v15 = vpop.f32.mrb[10].mxu1 }
 0x182   : > { %v988_v45 = vadd.f32 %v987_v39, %v3425_v35  ;;  %v1068_v19 = vadd.f32 %v1067_v15, %v3425_v35  ;;  %v989_v46 = vpop.f32.mrb[11].mxu0  ;;  %v1069_v56 = vpop.f32.mrb[11].mxu1 }
 0x183   : > { %v2513_v57 = vpack.c.bf16 %v986_v37, %v984_v29  ;;  %v2561_v1 = vpack.c.bf16 %v1066_v38, %v1064_v30  ;;  %v990_v24 = vadd.f32 %v989_v46, %v3427_v43  ;;  %v1070_v34 = vadd.f32 %v1069_v56, %v3427_v43 }
 0x185   : > { %2096 = vst [vmem:[%s3438_s9 + $0x60] sm:$0xff] %v2513_v57  ;;  %2144 = vst [vmem:[%s3438_s9 + $0x1e0] sm:$0xff] %v2561_v1  ;;  %v2516_v44 = vpack.c.bf16 %v990_v24, %v988_v45  ;;  %v2564_v54 = vpack.c.bf16 %v1070_v34, %v1068_v19 }
 0x187   : > { %2099 = vst [vmem:[%s3438_s9 + $0x78] sm:$0xff] %v2516_v44  ;;  %2147 = vst [vmem:[%s3438_s9 + $0x1f8] sm:$0xff] %v2564_v54  ;;  %v993_v55 = vpop.f32.mrb[12].mxu0  ;;  %v1073_v5 = vpop.f32.mrb[12].mxu1 }
 0x188   : > { %v994_v6 = vadd.f32 %v993_v55, %v3425_v35  ;;  %v1074_v17 = vadd.f32 %v1073_v5, %v3425_v35  ;;  %v995_v18 = vpop.f32.mrb[13].mxu0  ;;  %v1075_v31 = vpop.f32.mrb[13].mxu1 }
 0x189   : > { %v996_v32 = vadd.f32 %v995_v18, %v3427_v43  ;;  %v1076_v40 = vadd.f32 %v1075_v31, %v3427_v43  ;;  %v997_v41 = vpop.f32.mrb[14].mxu0  ;;  %v1077_v42 = vpop.f32.mrb[14].mxu1 }
 0x18a   : > { %v998_v47 = vadd.f32 %v997_v41, %v3425_v35  ;;  %v1078_v48 = vadd.f32 %v1077_v42, %v3425_v35  ;;  %v999_v49 = vpop.f32.mrb[15].mxu0  ;;  %v1079_v50 = vpop.f32.mrb[15].mxu1 }
 0x18b   : > { %v2519_v51 = vpack.c.bf16 %v996_v32, %v994_v6  ;;  %v2567_v52 = vpack.c.bf16 %v1076_v40, %v1074_v17  ;;  %v1000_v53 = vadd.f32 %v999_v49, %v3427_v43  ;;  %v1080_v58 = vadd.f32 %v1079_v50, %v3427_v43 }
 0x18d   : > { %2102 = vst [vmem:[%s3438_s9 + $0x90] sm:$0xff] %v2519_v51  ;;  %2150 = vst [vmem:[%s3438_s9 + $0x210] sm:$0xff] %v2567_v52  ;;  %v2522_v59 = vpack.c.bf16 %v1000_v53, %v998_v47  ;;  %v2570_v60 = vpack.c.bf16 %v1080_v58, %v1078_v48 }
 0x18f   : > { %2105 = vst [vmem:[%s3438_s9 + $0xa8] sm:$0xff] %v2522_v59  ;;  %2153 = vst [vmem:[%s3438_s9 + $0x228] sm:$0xff] %v2570_v60  ;;  %v1003_v61 = vpop.f32.mrb[16].mxu0  ;;  %v1083_v62 = vpop.f32.mrb[16].mxu1 }
 0x190   : > { %v1004_v63 = vadd.f32 %v1003_v61, %v3425_v35  ;;  %v1084_v0 = vadd.f32 %v1083_v62, %v3425_v35  ;;  %v1005_v3 = vpop.f32.mrb[17].mxu0  ;;  %v1085_v4 = vpop.f32.mrb[17].mxu1 }
 0x191   : > { %v1006_v7 = vadd.f32 %v1005_v3, %v3427_v43  ;;  %v1086_v8 = vadd.f32 %v1085_v4, %v3427_v43  ;;  %v1007_v9 = vpop.f32.mrb[18].mxu0  ;;  %v1087_v10 = vpop.f32.mrb[18].mxu1 }
 0x192   : > { %v1008_v11 = vadd.f32 %v1007_v9, %v3425_v35  ;;  %v1088_v14 = vadd.f32 %v1087_v10, %v3425_v35  ;;  %v1009_v16 = vpop.f32.mrb[19].mxu0  ;;  %v1089_v20 = vpop.f32.mrb[19].mxu1 }
 0x193   : > { %v2525_v21 = vpack.c.bf16 %v1006_v7, %v1004_v63  ;;  %v2573_v22 = vpack.c.bf16 %v1086_v8, %v1084_v0  ;;  %v1010_v25 = vadd.f32 %v1009_v16, %v3427_v43  ;;  %v1090_v26 = vadd.f32 %v1089_v20, %v3427_v43 }
 0x195   : > { %2108 = vst [vmem:[%s3438_s9 + $0xc0] sm:$0xff] %v2525_v21  ;;  %2156 = vst [vmem:[%s3438_s9 + $0x240] sm:$0xff] %v2573_v22  ;;  %v2528_v27 = vpack.c.bf16 %v1010_v25, %v1008_v11  ;;  %v2576_v28 = vpack.c.bf16 %v1090_v26, %v1088_v14 }
 0x197   : > { %2111 = vst [vmem:[%s3438_s9 + $0xd8] sm:$0xff] %v2528_v27  ;;  %2159 = vst [vmem:[%s3438_s9 + $0x258] sm:$0xff] %v2576_v28  ;;  %v1013_v29 = vpop.f32.mrb[20].mxu0  ;;  %v1093_v30 = vpop.f32.mrb[20].mxu1 }
 0x198   : > { %v1014_v33 = vadd.f32 %v1013_v29, %v3425_v35  ;;  %v1094_v36 = vadd.f32 %v1093_v30, %v3425_v35  ;;  %v1015_v37 = vpop.f32.mrb[21].mxu0  ;;  %v1095_v38 = vpop.f32.mrb[21].mxu1 }
 0x199   : > { %v1016_v39 = vadd.f32 %v1015_v37, %v3427_v43  ;;  %v1096_v15 = vadd.f32 %v1095_v38, %v3427_v43  ;;  %v1017_v45 = vpop.f32.mrb[22].mxu0  ;;  %v1097_v19 = vpop.f32.mrb[22].mxu1 }
 0x19a   : > { %v1018_v46 = vadd.f32 %v1017_v45, %v3425_v35  ;;  %v1098_v56 = vadd.f32 %v1097_v19, %v3425_v35  ;;  %v1019_v57 = vpop.f32.mrb[23].mxu0  ;;  %v1099_v1 = vpop.f32.mrb[23].mxu1 }
 0x19b   : > { %v2531_v24 = vpack.c.bf16 %v1016_v39, %v1014_v33  ;;  %v2579_v34 = vpack.c.bf16 %v1096_v15, %v1094_v36  ;;  %v1020_v44 = vadd.f32 %v1019_v57, %v3427_v43  ;;  %v1100_v54 = vadd.f32 %v1099_v1, %v3427_v43 }
 0x19d   : > { %2114 = vst [vmem:[%s3438_s9 + $0xf0] sm:$0xff] %v2531_v24  ;;  %2162 = vst [vmem:[%s3438_s9 + $0x270] sm:$0xff] %v2579_v34  ;;  %v2534_v55 = vpack.c.bf16 %v1020_v44, %v1018_v46  ;;  %v2582_v5 = vpack.c.bf16 %v1100_v54, %v1098_v56 }
 0x19f   : > { %2117 = vst [vmem:[%s3438_s9 + $0x108] sm:$0xff] %v2534_v55  ;;  %2165 = vst [vmem:[%s3438_s9 + $0x288] sm:$0xff] %v2582_v5  ;;  %v1023_v6 = vpop.f32.mrb[24].mxu0  ;;  %v1103_v17 = vpop.f32.mrb[24].mxu1 }
 0x1a0   : > { %v1024_v18 = vadd.f32 %v1023_v6, %v3425_v35  ;;  %v1104_v31 = vadd.f32 %v1103_v17, %v3425_v35  ;;  %v1025_v32 = vpop.f32.mrb[25].mxu0  ;;  %v1105_v40 = vpop.f32.mrb[25].mxu1 }
 0x1a1   : > { %v1026_v41 = vadd.f32 %v1025_v32, %v3427_v43  ;;  %v1106_v42 = vadd.f32 %v1105_v40, %v3427_v43  ;;  %v1027_v47 = vpop.f32.mrb[26].mxu0  ;;  %v1107_v48 = vpop.f32.mrb[26].mxu1 }
 0x1a2   : > { %v1028_v49 = vadd.f32 %v1027_v47, %v3425_v35  ;;  %v1108_v50 = vadd.f32 %v1107_v48, %v3425_v35  ;;  %v1029_v51 = vpop.f32.mrb[27].mxu0  ;;  %v1109_v52 = vpop.f32.mrb[27].mxu1 }
 0x1a3   : > { %v2537_v53 = vpack.c.bf16 %v1026_v41, %v1024_v18  ;;  %v2585_v58 = vpack.c.bf16 %v1106_v42, %v1104_v31  ;;  %v1030_v59 = vadd.f32 %v1029_v51, %v3427_v43  ;;  %v1110_v60 = vadd.f32 %v1109_v52, %v3427_v43 }
 0x1a5   : > { %2120 = vst [vmem:[%s3438_s9 + $0x120] sm:$0xff] %v2537_v53  ;;  %2168 = vst [vmem:[%s3438_s9 + $0x2a0] sm:$0xff] %v2585_v58  ;;  %v2540_v61 = vpack.c.bf16 %v1030_v59, %v1028_v49  ;;  %v2588_v62 = vpack.c.bf16 %v1110_v60, %v1108_v50 }
 0x1a7   : > { %2123 = vst [vmem:[%s3438_s9 + $0x138] sm:$0xff] %v2540_v61  ;;  %2171 = vst [vmem:[%s3438_s9 + $0x2b8] sm:$0xff] %v2588_v62  ;;  %v1033_v63 = vpop.f32.mrb[28].mxu0  ;;  %v1113_v0 = vpop.f32.mrb[28].mxu1 }
 0x1a8   : > { %v1034_v3 = vadd.f32 %v1033_v63, %v3425_v35  ;;  %v1114_v4 = vadd.f32 %v1113_v0, %v3425_v35  ;;  %v1035_v7 = vpop.f32.mrb[29].mxu0  ;;  %v1115_v8 = vpop.f32.mrb[29].mxu1 }
 0x1a9   : > { %v1036_v9 = vadd.f32 %v1035_v7, %v3427_v43  ;;  %v1116_v10 = vadd.f32 %v1115_v8, %v3427_v43  ;;  %v1037_v11 = vpop.f32.mrb[30].mxu0  ;;  %v1117_v14 = vpop.f32.mrb[30].mxu1 }
 0x1aa   : > { %v1038_v16 = vadd.f32 %v1037_v11, %v3425_v35  ;;  %v1118_v20 = vadd.f32 %v1117_v14, %v3425_v35  ;;  %v1039_v21 = vpop.f32.mrb[31].mxu0  ;;  %v1119_v22 = vpop.f32.mrb[31].mxu1 }
 0x1ab   : > { %v2543_v25 = vpack.c.bf16 %v1036_v9, %v1034_v3  ;;  %v2591_v26 = vpack.c.bf16 %v1116_v10, %v1114_v4  ;;  %v1040_v27 = vadd.f32 %v1039_v21, %v3427_v43  ;;  %v1120_v28 = vadd.f32 %v1119_v22, %v3427_v43 }
 0x1ad   : > { %2126 = vst [vmem:[%s3438_s9 + $0x150] sm:$0xff] %v2543_v25  ;;  %2174 = vst [vmem:[%s3438_s9 + $0x2d0] sm:$0xff] %v2591_v26  ;;  %v2546_v29 = vpack.c.bf16 %v1040_v27, %v1038_v16  ;;  %v2594_v30 = vpack.c.bf16 %v1120_v28, %v1118_v20 }
 0x1af   : > { %2129 = vst [vmem:[%s3438_s9 + $0x168] sm:$0xff] %v2546_v29  ;;  %2177 = vst [vmem:[%s3438_s9 + $0x2e8] sm:$0xff] %v2594_v30  ;;  %v1156_v33 = vpop.f32.mrb[32].mxu1  ;;  %v1349_v36 = vpop.f32.mrb[32].mxu0 }
 0x1b0   : > { %v1157_v37 = vadd.f32 %v1156_v33, %v3399_v2  ;;  %v1350_v35 = vadd.f32 %v1349_v36, %v3401_v12  ;;  %v1158_v38 = vpop.f32.mrb[33].mxu1  ;;  %v1351_v39 = vpop.f32.mrb[33].mxu0 }
 0x1b1   : > { %v1159_v15 = vadd.f32 %v1158_v38, %v3403_v13  ;;  %v1352_v43 = vadd.f32 %v1351_v39, %v3405_v23  ;;  %v1160_v45 = vpop.f32.mrb[34].mxu1  ;;  %v1353_v19 = vpop.f32.mrb[34].mxu0 }
 0x1b2   : > { %v1161_v46 = vadd.f32 %v1160_v45, %v3399_v2  ;;  %v1354_v56 = vadd.f32 %v1353_v19, %v3401_v12  ;;  %v1162_v57 = vpop.f32.mrb[35].mxu1  ;;  %v1355_v1 = vpop.f32.mrb[35].mxu0 }
 0x1b3   : > { %v2502_v24 = vpack.c.bf16 %v1159_v15, %v1157_v37  ;;  %v2503_v34 = vpack.c.bf16 %v1352_v43, %v1350_v35  ;;  %v1163_v44 = vadd.f32 %v1162_v57, %v3403_v13  ;;  %v1356_v54 = vadd.f32 %v1355_v1, %v3405_v23 }
 0x1b5   : > { %2085 = vst [vmem:[%s3438_s9 + $0x8] sm:$0xff] %v2502_v24  ;;  %2086 = vst [vmem:[%s3438_s9 + $0x10] sm:$0xff] %v2503_v34  ;;  %v2505_v55 = vpack.c.bf16 %v1163_v44, %v1161_v46  ;;  %v2506_v5 = vpack.c.bf16 %v1356_v54, %v1354_v56 }
 0x1b7   : > { %2088 = vst [vmem:[%s3438_s9 + $0x20] sm:$0xff] %v2505_v55  ;;  %2089 = vst [vmem:[%s3438_s9 + $0x28] sm:$0xff] %v2506_v5  ;;  %v1166_v6 = vpop.f32.mrb[36].mxu1  ;;  %v1359_v17 = vpop.f32.mrb[36].mxu0 }
 0x1b8   : > { %v1167_v18 = vadd.f32 %v1166_v6, %v3399_v2  ;;  %v1360_v31 = vadd.f32 %v1359_v17, %v3401_v12  ;;  %v1168_v32 = vpop.f32.mrb[37].mxu1  ;;  %v1361_v40 = vpop.f32.mrb[37].mxu0 }
 0x1b9   : > { %v1169_v41 = vadd.f32 %v1168_v32, %v3403_v13  ;;  %v1362_v42 = vadd.f32 %v1361_v40, %v3405_v23  ;;  %v1170_v47 = vpop.f32.mrb[38].mxu1  ;;  %v1363_v48 = vpop.f32.mrb[38].mxu0 }
 0x1ba   : > { %v1171_v49 = vadd.f32 %v1170_v47, %v3399_v2  ;;  %v1364_v50 = vadd.f32 %v1363_v48, %v3401_v12  ;;  %v1172_v51 = vpop.f32.mrb[39].mxu1  ;;  %v1365_v52 = vpop.f32.mrb[39].mxu0 }
 0x1bb   : > { %v2508_v53 = vpack.c.bf16 %v1169_v41, %v1167_v18  ;;  %v2509_v58 = vpack.c.bf16 %v1362_v42, %v1360_v31  ;;  %v1173_v59 = vadd.f32 %v1172_v51, %v3403_v13  ;;  %v1366_v60 = vadd.f32 %v1365_v52, %v3405_v23 }
 0x1bd   : > { %2091 = vst [vmem:[%s3438_s9 + $0x38] sm:$0xff] %v2508_v53  ;;  %2092 = vst [vmem:[%s3438_s9 + $0x40] sm:$0xff] %v2509_v58  ;;  %v2511_v61 = vpack.c.bf16 %v1173_v59, %v1171_v49  ;;  %v2512_v62 = vpack.c.bf16 %v1366_v60, %v1364_v50 }
 0x1bf   : > { %2094 = vst [vmem:[%s3438_s9 + $0x50] sm:$0xff] %v2511_v61  ;;  %2095 = vst [vmem:[%s3438_s9 + $0x58] sm:$0xff] %v2512_v62  ;;  %v1176_v63 = vpop.f32.mrb[40].mxu1  ;;  %v1369_v0 = vpop.f32.mrb[40].mxu0 }
 0x1c0   : > { %v1177_v3 = vadd.f32 %v1176_v63, %v3399_v2  ;;  %v1370_v4 = vadd.f32 %v1369_v0, %v3401_v12  ;;  %v1178_v7 = vpop.f32.mrb[41].mxu1  ;;  %v1371_v8 = vpop.f32.mrb[41].mxu0 }
 0x1c1   : > { %v1179_v9 = vadd.f32 %v1178_v7, %v3403_v13  ;;  %v1372_v10 = vadd.f32 %v1371_v8, %v3405_v23  ;;  %v1180_v11 = vpop.f32.mrb[42].mxu1  ;;  %v1373_v14 = vpop.f32.mrb[42].mxu0 }
 0x1c2   : > { %v1181_v16 = vadd.f32 %v1180_v11, %v3399_v2  ;;  %v1374_v20 = vadd.f32 %v1373_v14, %v3401_v12  ;;  %v1182_v21 = vpop.f32.mrb[43].mxu1  ;;  %v1375_v22 = vpop.f32.mrb[43].mxu0 }
 0x1c3   : > { %v2514_v25 = vpack.c.bf16 %v1179_v9, %v1177_v3  ;;  %v2515_v26 = vpack.c.bf16 %v1372_v10, %v1370_v4  ;;  %v1183_v27 = vadd.f32 %v1182_v21, %v3403_v13  ;;  %v1376_v28 = vadd.f32 %v1375_v22, %v3405_v23 }
 0x1c5   : > { %2097 = vst [vmem:[%s3438_s9 + $0x68] sm:$0xff] %v2514_v25  ;;  %2098 = vst [vmem:[%s3438_s9 + $0x70] sm:$0xff] %v2515_v26  ;;  %v2517_v29 = vpack.c.bf16 %v1183_v27, %v1181_v16  ;;  %v2518_v30 = vpack.c.bf16 %v1376_v28, %v1374_v20 }
 0x1c7   : > { %2100 = vst [vmem:[%s3438_s9 + $0x80] sm:$0xff] %v2517_v29  ;;  %2101 = vst [vmem:[%s3438_s9 + $0x88] sm:$0xff] %v2518_v30  ;;  %v1186_v33 = vpop.f32.mrb[44].mxu1  ;;  %v1379_v36 = vpop.f32.mrb[44].mxu0 }
 0x1c8   : > { %v1187_v37 = vadd.f32 %v1186_v33, %v3399_v2  ;;  %v1380_v35 = vadd.f32 %v1379_v36, %v3401_v12  ;;  %v1188_v38 = vpop.f32.mrb[45].mxu1  ;;  %v1381_v39 = vpop.f32.mrb[45].mxu0 }
 0x1c9   : > { %v1189_v15 = vadd.f32 %v1188_v38, %v3403_v13  ;;  %v1382_v43 = vadd.f32 %v1381_v39, %v3405_v23  ;;  %v1190_v45 = vpop.f32.mrb[46].mxu1  ;;  %v1383_v19 = vpop.f32.mrb[46].mxu0 }
 0x1ca   : > { %v1191_v46 = vadd.f32 %v1190_v45, %v3399_v2  ;;  %v1384_v56 = vadd.f32 %v1383_v19, %v3401_v12  ;;  %v1192_v57 = vpop.f32.mrb[47].mxu1  ;;  %v1385_v1 = vpop.f32.mrb[47].mxu0 }
 0x1cb   : > { %v2520_v24 = vpack.c.bf16 %v1189_v15, %v1187_v37  ;;  %v2521_v34 = vpack.c.bf16 %v1382_v43, %v1380_v35  ;;  %v1193_v44 = vadd.f32 %v1192_v57, %v3403_v13  ;;  %v1386_v54 = vadd.f32 %v1385_v1, %v3405_v23 }
 0x1cd   : > { %2103 = vst [vmem:[%s3438_s9 + $0x98] sm:$0xff] %v2520_v24  ;;  %2104 = vst [vmem:[%s3438_s9 + $0xa0] sm:$0xff] %v2521_v34  ;;  %v2523_v55 = vpack.c.bf16 %v1193_v44, %v1191_v46  ;;  %v2524_v5 = vpack.c.bf16 %v1386_v54, %v1384_v56 }
 0x1cf   : > { %2106 = vst [vmem:[%s3438_s9 + $0xb0] sm:$0xff] %v2523_v55  ;;  %2107 = vst [vmem:[%s3438_s9 + $0xb8] sm:$0xff] %v2524_v5  ;;  %v1196_v6 = vpop.f32.mrb[48].mxu1  ;;  %v1389_v17 = vpop.f32.mrb[48].mxu0 }
 0x1d0   : > { %v1197_v18 = vadd.f32 %v1196_v6, %v3399_v2  ;;  %v1390_v31 = vadd.f32 %v1389_v17, %v3401_v12  ;;  %v1198_v32 = vpop.f32.mrb[49].mxu1  ;;  %v1391_v40 = vpop.f32.mrb[49].mxu0 }
 0x1d1   : > { %v1199_v41 = vadd.f32 %v1198_v32, %v3403_v13  ;;  %v1392_v42 = vadd.f32 %v1391_v40, %v3405_v23  ;;  %v1200_v47 = vpop.f32.mrb[50].mxu1  ;;  %v1393_v48 = vpop.f32.mrb[50].mxu0 }
 0x1d2   : > { %v1201_v49 = vadd.f32 %v1200_v47, %v3399_v2  ;;  %v1394_v50 = vadd.f32 %v1393_v48, %v3401_v12  ;;  %v1202_v51 = vpop.f32.mrb[51].mxu1  ;;  %v1395_v52 = vpop.f32.mrb[51].mxu0 }
 0x1d3   : > { %v2526_v53 = vpack.c.bf16 %v1199_v41, %v1197_v18  ;;  %v2527_v58 = vpack.c.bf16 %v1392_v42, %v1390_v31  ;;  %v1203_v59 = vadd.f32 %v1202_v51, %v3403_v13  ;;  %v1396_v60 = vadd.f32 %v1395_v52, %v3405_v23 }
 0x1d5   : > { %2109 = vst [vmem:[%s3438_s9 + $0xc8] sm:$0xff] %v2526_v53  ;;  %2110 = vst [vmem:[%s3438_s9 + $0xd0] sm:$0xff] %v2527_v58  ;;  %v2529_v61 = vpack.c.bf16 %v1203_v59, %v1201_v49  ;;  %v2530_v62 = vpack.c.bf16 %v1396_v60, %v1394_v50 }
 0x1d7   : > { %2112 = vst [vmem:[%s3438_s9 + $0xe0] sm:$0xff] %v2529_v61  ;;  %2113 = vst [vmem:[%s3438_s9 + $0xe8] sm:$0xff] %v2530_v62  ;;  %v1206_v63 = vpop.f32.mrb[52].mxu1  ;;  %v1399_v0 = vpop.f32.mrb[52].mxu0 }
 0x1d8   : > { %v1207_v3 = vadd.f32 %v1206_v63, %v3399_v2  ;;  %v1400_v4 = vadd.f32 %v1399_v0, %v3401_v12  ;;  %v1208_v7 = vpop.f32.mrb[53].mxu1  ;;  %v1401_v8 = vpop.f32.mrb[53].mxu0 }
 0x1d9   : > { %v1209_v9 = vadd.f32 %v1208_v7, %v3403_v13  ;;  %v1402_v10 = vadd.f32 %v1401_v8, %v3405_v23  ;;  %v1210_v11 = vpop.f32.mrb[54].mxu1  ;;  %v1403_v14 = vpop.f32.mrb[54].mxu0 }
 0x1da   : > { %v1211_v16 = vadd.f32 %v1210_v11, %v3399_v2  ;;  %v1404_v20 = vadd.f32 %v1403_v14, %v3401_v12  ;;  %v1212_v21 = vpop.f32.mrb[55].mxu1  ;;  %v1405_v22 = vpop.f32.mrb[55].mxu0 }
 0x1db   : > { %v2532_v25 = vpack.c.bf16 %v1209_v9, %v1207_v3  ;;  %v2533_v26 = vpack.c.bf16 %v1402_v10, %v1400_v4  ;;  %v1213_v27 = vadd.f32 %v1212_v21, %v3403_v13  ;;  %v1406_v28 = vadd.f32 %v1405_v22, %v3405_v23 }
 0x1dd   : > { %2115 = vst [vmem:[%s3438_s9 + $0xf8] sm:$0xff] %v2532_v25  ;;  %2116 = vst [vmem:[%s3438_s9 + $0x100] sm:$0xff] %v2533_v26  ;;  %v2535_v29 = vpack.c.bf16 %v1213_v27, %v1211_v16  ;;  %v2536_v30 = vpack.c.bf16 %v1406_v28, %v1404_v20 }
 0x1df   : > { %2118 = vst [vmem:[%s3438_s9 + $0x110] sm:$0xff] %v2535_v29  ;;  %2119 = vst [vmem:[%s3438_s9 + $0x118] sm:$0xff] %v2536_v30  ;;  %v1216_v33 = vpop.f32.mrb[56].mxu1  ;;  %v1409_v36 = vpop.f32.mrb[56].mxu0 }
 0x1e0   : > { %v1217_v37 = vadd.f32 %v1216_v33, %v3399_v2  ;;  %v1410_v35 = vadd.f32 %v1409_v36, %v3401_v12  ;;  %v1218_v38 = vpop.f32.mrb[57].mxu1  ;;  %v1411_v39 = vpop.f32.mrb[57].mxu0 }
 0x1e1   : > { %v1219_v15 = vadd.f32 %v1218_v38, %v3403_v13  ;;  %v1412_v43 = vadd.f32 %v1411_v39, %v3405_v23  ;;  %v1220_v45 = vpop.f32.mrb[58].mxu1  ;;  %v1413_v19 = vpop.f32.mrb[58].mxu0 }
 0x1e2   : > { %v1221_v46 = vadd.f32 %v1220_v45, %v3399_v2  ;;  %v1414_v56 = vadd.f32 %v1413_v19, %v3401_v12  ;;  %v1222_v57 = vpop.f32.mrb[59].mxu1  ;;  %v1415_v1 = vpop.f32.mrb[59].mxu0 }
 0x1e3   : > { %v2538_v24 = vpack.c.bf16 %v1219_v15, %v1217_v37  ;;  %v2539_v34 = vpack.c.bf16 %v1412_v43, %v1410_v35  ;;  %v1223_v44 = vadd.f32 %v1222_v57, %v3403_v13  ;;  %v1416_v54 = vadd.f32 %v1415_v1, %v3405_v23 }
 0x1e5   : > { %2121 = vst [vmem:[%s3438_s9 + $0x128] sm:$0xff] %v2538_v24  ;;  %2122 = vst [vmem:[%s3438_s9 + $0x130] sm:$0xff] %v2539_v34  ;;  %v2541_v55 = vpack.c.bf16 %v1223_v44, %v1221_v46  ;;  %v2542_v5 = vpack.c.bf16 %v1416_v54, %v1414_v56 }
 0x1e7   : > { %2124 = vst [vmem:[%s3438_s9 + $0x140] sm:$0xff] %v2541_v55  ;;  %2125 = vst [vmem:[%s3438_s9 + $0x148] sm:$0xff] %v2542_v5  ;;  %v1226_v6 = vpop.f32.mrb[60].mxu1  ;;  %v1419_v17 = vpop.f32.mrb[60].mxu0 }
 0x1e8   : > { %v1227_v18 = vadd.f32 %v1226_v6, %v3399_v2  ;;  %v1420_v31 = vadd.f32 %v1419_v17, %v3401_v12  ;;  %v1228_v32 = vpop.f32.mrb[61].mxu1  ;;  %v1421_v40 = vpop.f32.mrb[61].mxu0 }
 0x1e9   : > { %v1229_v41 = vadd.f32 %v1228_v32, %v3403_v13  ;;  %v1422_v42 = vadd.f32 %v1421_v40, %v3405_v23  ;;  %v1230_v47 = vpop.f32.mrb[62].mxu1  ;;  %v1423_v48 = vpop.f32.mrb[62].mxu0 }
 0x1ea   : > { %v1231_v49 = vadd.f32 %v1230_v47, %v3399_v2  ;;  %v1424_v50 = vadd.f32 %v1423_v48, %v3401_v12  ;;  %v1232_v51 = vpop.f32.mrb[63].mxu1  ;;  %v1425_v52 = vpop.f32.mrb[63].mxu0 }
 0x1eb   : > { %v2544_v53 = vpack.c.bf16 %v1229_v41, %v1227_v18  ;;  %v2545_v58 = vpack.c.bf16 %v1422_v42, %v1420_v31  ;;  %v1233_v59 = vadd.f32 %v1232_v51, %v3403_v13  ;;  %v1426_v60 = vadd.f32 %v1425_v52, %v3405_v23 }
 0x1ed   : > { %2127 = vst [vmem:[%s3438_s9 + $0x158] sm:$0xff] %v2544_v53  ;;  %2128 = vst [vmem:[%s3438_s9 + $0x160] sm:$0xff] %v2545_v58  ;;  %v2547_v61 = vpack.c.bf16 %v1233_v59, %v1231_v49  ;;  %v2548_v62 = vpack.c.bf16 %v1426_v60, %v1424_v50 }
 0x1ef   : > { %2130 = vst [vmem:[%s3438_s9 + $0x170] sm:$0xff] %v2547_v61  ;;  %2131 = vst [vmem:[%s3438_s9 + $0x178] sm:$0xff] %v2548_v62  ;;  %v1236_v63 = vpop.f32.mrb[64].mxu1  ;;  %v1429_v0 = vpop.f32.mrb[64].mxu0 }
 0x1f0   : > { %v1237_v3 = vadd.f32 %v1236_v63, %v3399_v2  ;;  %v1430_v4 = vadd.f32 %v1429_v0, %v3401_v12  ;;  %v1238_v7 = vpop.f32.mrb[65].mxu1  ;;  %v1431_v8 = vpop.f32.mrb[65].mxu0 }
 0x1f1   : > { %v1239_v9 = vadd.f32 %v1238_v7, %v3403_v13  ;;  %v1432_v10 = vadd.f32 %v1431_v8, %v3405_v23  ;;  %v1240_v11 = vpop.f32.mrb[66].mxu1  ;;  %v1433_v14 = vpop.f32.mrb[66].mxu0 }
 0x1f2   : > { %v1241_v16 = vadd.f32 %v1240_v11, %v3399_v2  ;;  %v1434_v20 = vadd.f32 %v1433_v14, %v3401_v12  ;;  %v1242_v21 = vpop.f32.mrb[67].mxu1  ;;  %v1435_v22 = vpop.f32.mrb[67].mxu0 }
 0x1f3   : > { %v2550_v25 = vpack.c.bf16 %v1239_v9, %v1237_v3  ;;  %v2551_v26 = vpack.c.bf16 %v1432_v10, %v1430_v4  ;;  %v1243_v27 = vadd.f32 %v1242_v21, %v3403_v13  ;;  %v1436_v28 = vadd.f32 %v1435_v22, %v3405_v23 }
 0x1f5   : > { %2133 = vst [vmem:[%s3438_s9 + $0x188] sm:$0xff] %v2550_v25  ;;  %2134 = vst [vmem:[%s3438_s9 + $0x190] sm:$0xff] %v2551_v26  ;;  %v2553_v29 = vpack.c.bf16 %v1243_v27, %v1241_v16  ;;  %v2554_v30 = vpack.c.bf16 %v1436_v28, %v1434_v20 }
 0x1f7   : > { %2136 = vst [vmem:[%s3438_s9 + $0x1a0] sm:$0xff] %v2553_v29  ;;  %2137 = vst [vmem:[%s3438_s9 + $0x1a8] sm:$0xff] %v2554_v30  ;;  %v1246_v33 = vpop.f32.mrb[68].mxu1  ;;  %v1439_v36 = vpop.f32.mrb[68].mxu0 }
 0x1f8   : > { %v1247_v37 = vadd.f32 %v1246_v33, %v3399_v2  ;;  %v1440_v35 = vadd.f32 %v1439_v36, %v3401_v12  ;;  %v1248_v38 = vpop.f32.mrb[69].mxu1  ;;  %v1441_v39 = vpop.f32.mrb[69].mxu0 }
 0x1f9   : > { %v1249_v15 = vadd.f32 %v1248_v38, %v3403_v13  ;;  %v1442_v43 = vadd.f32 %v1441_v39, %v3405_v23  ;;  %v1250_v45 = vpop.f32.mrb[70].mxu1  ;;  %v1443_v19 = vpop.f32.mrb[70].mxu0 }
 0x1fa   : > { %v1251_v46 = vadd.f32 %v1250_v45, %v3399_v2  ;;  %v1444_v56 = vadd.f32 %v1443_v19, %v3401_v12  ;;  %v1252_v57 = vpop.f32.mrb[71].mxu1  ;;  %v1445_v1 = vpop.f32.mrb[71].mxu0 }
 0x1fb   : > { %v2556_v24 = vpack.c.bf16 %v1249_v15, %v1247_v37  ;;  %v2557_v34 = vpack.c.bf16 %v1442_v43, %v1440_v35  ;;  %v1253_v44 = vadd.f32 %v1252_v57, %v3403_v13  ;;  %v1446_v54 = vadd.f32 %v1445_v1, %v3405_v23 }
 0x1fd   : > { %2139 = vst [vmem:[%s3438_s9 + $0x1b8] sm:$0xff] %v2556_v24  ;;  %2140 = vst [vmem:[%s3438_s9 + $0x1c0] sm:$0xff] %v2557_v34  ;;  %v2559_v55 = vpack.c.bf16 %v1253_v44, %v1251_v46  ;;  %v2560_v5 = vpack.c.bf16 %v1446_v54, %v1444_v56 }
 0x1ff   : > { %2142 = vst [vmem:[%s3438_s9 + $0x1d0] sm:$0xff] %v2559_v55  ;;  %2143 = vst [vmem:[%s3438_s9 + $0x1d8] sm:$0xff] %v2560_v5  ;;  %v1256_v6 = vpop.f32.mrb[72].mxu1  ;;  %v1449_v17 = vpop.f32.mrb[72].mxu0 }
 0x200   : > { %v1257_v18 = vadd.f32 %v1256_v6, %v3399_v2  ;;  %v1450_v31 = vadd.f32 %v1449_v17, %v3401_v12  ;;  %v1258_v32 = vpop.f32.mrb[73].mxu1  ;;  %v1451_v40 = vpop.f32.mrb[73].mxu0 }
 0x201   : > { %v1259_v41 = vadd.f32 %v1258_v32, %v3403_v13  ;;  %v1452_v42 = vadd.f32 %v1451_v40, %v3405_v23  ;;  %v1260_v47 = vpop.f32.mrb[74].mxu1  ;;  %v1453_v48 = vpop.f32.mrb[74].mxu0 }
 0x202   : > { %v1261_v49 = vadd.f32 %v1260_v47, %v3399_v2  ;;  %v1454_v50 = vadd.f32 %v1453_v48, %v3401_v12  ;;  %v1262_v51 = vpop.f32.mrb[75].mxu1  ;;  %v1455_v52 = vpop.f32.mrb[75].mxu0 }
 0x203   : > { %v2562_v53 = vpack.c.bf16 %v1259_v41, %v1257_v18  ;;  %v2563_v58 = vpack.c.bf16 %v1452_v42, %v1450_v31  ;;  %v1263_v59 = vadd.f32 %v1262_v51, %v3403_v13  ;;  %v1456_v60 = vadd.f32 %v1455_v52, %v3405_v23 }
 0x205   : > { %2145 = vst [vmem:[%s3438_s9 + $0x1e8] sm:$0xff] %v2562_v53  ;;  %2146 = vst [vmem:[%s3438_s9 + $0x1f0] sm:$0xff] %v2563_v58  ;;  %v2565_v61 = vpack.c.bf16 %v1263_v59, %v1261_v49  ;;  %v2566_v62 = vpack.c.bf16 %v1456_v60, %v1454_v50 }
 0x207   : > { %2148 = vst [vmem:[%s3438_s9 + $0x200] sm:$0xff] %v2565_v61  ;;  %2149 = vst [vmem:[%s3438_s9 + $0x208] sm:$0xff] %v2566_v62  ;;  %v1266_v63 = vpop.f32.mrb[76].mxu1  ;;  %v1459_v0 = vpop.f32.mrb[76].mxu0 }
 0x208   : > { %v1267_v3 = vadd.f32 %v1266_v63, %v3399_v2  ;;  %v1460_v4 = vadd.f32 %v1459_v0, %v3401_v12  ;;  %v1268_v7 = vpop.f32.mrb[77].mxu1  ;;  %v1461_v8 = vpop.f32.mrb[77].mxu0 }
 0x209   : > { %v1269_v9 = vadd.f32 %v1268_v7, %v3403_v13  ;;  %v1462_v10 = vadd.f32 %v1461_v8, %v3405_v23  ;;  %v1270_v11 = vpop.f32.mrb[78].mxu1  ;;  %v1463_v14 = vpop.f32.mrb[78].mxu0 }
 0x20a   : > { %v1271_v16 = vadd.f32 %v1270_v11, %v3399_v2  ;;  %v1464_v20 = vadd.f32 %v1463_v14, %v3401_v12  ;;  %v1272_v21 = vpop.f32.mrb[79].mxu1  ;;  %v1465_v22 = vpop.f32.mrb[79].mxu0 }
 0x20b   : > { %v2568_v25 = vpack.c.bf16 %v1269_v9, %v1267_v3  ;;  %v2569_v26 = vpack.c.bf16 %v1462_v10, %v1460_v4  ;;  %v1273_v27 = vadd.f32 %v1272_v21, %v3403_v13  ;;  %v1466_v28 = vadd.f32 %v1465_v22, %v3405_v23 }
 0x20d   : > { %2151 = vst [vmem:[%s3438_s9 + $0x218] sm:$0xff] %v2568_v25  ;;  %2152 = vst [vmem:[%s3438_s9 + $0x220] sm:$0xff] %v2569_v26  ;;  %v2571_v29 = vpack.c.bf16 %v1273_v27, %v1271_v16  ;;  %v2572_v30 = vpack.c.bf16 %v1466_v28, %v1464_v20 }
 0x20f   : > { %2154 = vst [vmem:[%s3438_s9 + $0x230] sm:$0xff] %v2571_v29  ;;  %2155 = vst [vmem:[%s3438_s9 + $0x238] sm:$0xff] %v2572_v30  ;;  %v1276_v33 = vpop.f32.mrb[80].mxu1  ;;  %v1469_v36 = vpop.f32.mrb[80].mxu0 }
 0x210   : > { %v1277_v37 = vadd.f32 %v1276_v33, %v3399_v2  ;;  %v1470_v35 = vadd.f32 %v1469_v36, %v3401_v12  ;;  %v1278_v38 = vpop.f32.mrb[81].mxu1  ;;  %v1471_v39 = vpop.f32.mrb[81].mxu0 }
 0x211   : > { %v1279_v15 = vadd.f32 %v1278_v38, %v3403_v13  ;;  %v1472_v43 = vadd.f32 %v1471_v39, %v3405_v23  ;;  %v1280_v45 = vpop.f32.mrb[82].mxu1  ;;  %v1473_v19 = vpop.f32.mrb[82].mxu0 }
 0x212   : > { %v1281_v46 = vadd.f32 %v1280_v45, %v3399_v2  ;;  %v1474_v56 = vadd.f32 %v1473_v19, %v3401_v12  ;;  %v1282_v57 = vpop.f32.mrb[83].mxu1  ;;  %v1475_v1 = vpop.f32.mrb[83].mxu0 }
 0x213   : > { %v2574_v24 = vpack.c.bf16 %v1279_v15, %v1277_v37  ;;  %v2575_v34 = vpack.c.bf16 %v1472_v43, %v1470_v35  ;;  %v1283_v44 = vadd.f32 %v1282_v57, %v3403_v13  ;;  %v1476_v54 = vadd.f32 %v1475_v1, %v3405_v23 }
 0x215   : > { %2157 = vst [vmem:[%s3438_s9 + $0x248] sm:$0xff] %v2574_v24  ;;  %2158 = vst [vmem:[%s3438_s9 + $0x250] sm:$0xff] %v2575_v34  ;;  %v2577_v55 = vpack.c.bf16 %v1283_v44, %v1281_v46  ;;  %v2578_v5 = vpack.c.bf16 %v1476_v54, %v1474_v56 }
 0x217   : > { %2160 = vst [vmem:[%s3438_s9 + $0x260] sm:$0xff] %v2577_v55  ;;  %2161 = vst [vmem:[%s3438_s9 + $0x268] sm:$0xff] %v2578_v5  ;;  %v1286_v6 = vpop.f32.mrb[84].mxu1  ;;  %v1479_v17 = vpop.f32.mrb[84].mxu0 }
 0x218   : > { %v1287_v18 = vadd.f32 %v1286_v6, %v3399_v2  ;;  %v1480_v31 = vadd.f32 %v1479_v17, %v3401_v12  ;;  %v1288_v32 = vpop.f32.mrb[85].mxu1  ;;  %v1481_v40 = vpop.f32.mrb[85].mxu0 }
 0x219   : > { %v1289_v41 = vadd.f32 %v1288_v32, %v3403_v13  ;;  %v1482_v42 = vadd.f32 %v1481_v40, %v3405_v23  ;;  %v1290_v47 = vpop.f32.mrb[86].mxu1  ;;  %v1483_v48 = vpop.f32.mrb[86].mxu0 }
 0x21a   : > { %v1291_v49 = vadd.f32 %v1290_v47, %v3399_v2  ;;  %v1484_v50 = vadd.f32 %v1483_v48, %v3401_v12  ;;  %v1292_v51 = vpop.f32.mrb[87].mxu1  ;;  %v1485_v52 = vpop.f32.mrb[87].mxu0 }
 0x21b   : > { %v2580_v53 = vpack.c.bf16 %v1289_v41, %v1287_v18  ;;  %v2581_v58 = vpack.c.bf16 %v1482_v42, %v1480_v31  ;;  %v1293_v59 = vadd.f32 %v1292_v51, %v3403_v13  ;;  %v1486_v60 = vadd.f32 %v1485_v52, %v3405_v23 }
 0x21d   : > { %2163 = vst [vmem:[%s3438_s9 + $0x278] sm:$0xff] %v2580_v53  ;;  %2164 = vst [vmem:[%s3438_s9 + $0x280] sm:$0xff] %v2581_v58  ;;  %v2583_v61 = vpack.c.bf16 %v1293_v59, %v1291_v49  ;;  %v2584_v62 = vpack.c.bf16 %v1486_v60, %v1484_v50 }
 0x21f   : > { %2166 = vst [vmem:[%s3438_s9 + $0x290] sm:$0xff] %v2583_v61  ;;  %2167 = vst [vmem:[%s3438_s9 + $0x298] sm:$0xff] %v2584_v62  ;;  %v1296_v63 = vpop.f32.mrb[88].mxu1  ;;  %v1489_v0 = vpop.f32.mrb[88].mxu0 }
 0x220   : > { %v1297_v3 = vadd.f32 %v1296_v63, %v3399_v2  ;;  %v1490_v4 = vadd.f32 %v1489_v0, %v3401_v12  ;;  %v1298_v7 = vpop.f32.mrb[89].mxu1  ;;  %v1491_v8 = vpop.f32.mrb[89].mxu0 }
 0x221   : > { %v1299_v9 = vadd.f32 %v1298_v7, %v3403_v13  ;;  %v1492_v10 = vadd.f32 %v1491_v8, %v3405_v23  ;;  %v1300_v11 = vpop.f32.mrb[90].mxu1  ;;  %v1493_v14 = vpop.f32.mrb[90].mxu0 }
 0x222   : > { %v1301_v16 = vadd.f32 %v1300_v11, %v3399_v2  ;;  %v1494_v20 = vadd.f32 %v1493_v14, %v3401_v12  ;;  %v1302_v21 = vpop.f32.mrb[91].mxu1  ;;  %v1495_v22 = vpop.f32.mrb[91].mxu0 }
 0x223   : > { %v2586_v25 = vpack.c.bf16 %v1299_v9, %v1297_v3  ;;  %v2587_v26 = vpack.c.bf16 %v1492_v10, %v1490_v4  ;;  %v1303_v27 = vadd.f32 %v1302_v21, %v3403_v13  ;;  %v1496_v28 = vadd.f32 %v1495_v22, %v3405_v23 }
 0x225   : > { %2169 = vst [vmem:[%s3438_s9 + $0x2a8] sm:$0xff] %v2586_v25  ;;  %2170 = vst [vmem:[%s3438_s9 + $0x2b0] sm:$0xff] %v2587_v26  ;;  %v2589_v29 = vpack.c.bf16 %v1303_v27, %v1301_v16  ;;  %v2590_v30 = vpack.c.bf16 %v1496_v28, %v1494_v20 }
 0x227   : > { %2172 = vst [vmem:[%s3438_s9 + $0x2c0] sm:$0xff] %v2589_v29  ;;  %2173 = vst [vmem:[%s3438_s9 + $0x2c8] sm:$0xff] %v2590_v30  ;;  %v1306_v33 = vpop.f32.mrb[92].mxu1  ;;  %v1499_v36 = vpop.f32.mrb[92].mxu0 }
 0x228   : > { %v1307_v37 = vadd.f32 %v1306_v33, %v3399_v2  ;;  %v1500_v35 = vadd.f32 %v1499_v36, %v3401_v12  ;;  %v1308_v38 = vpop.f32.mrb[93].mxu1  ;;  %v1501_v39 = vpop.f32.mrb[93].mxu0 }
 0x229   : > { %v1309_v15 = vadd.f32 %v1308_v38, %v3403_v13  ;;  %v1502_v43 = vadd.f32 %v1501_v39, %v3405_v23  ;;  %v1310_v45 = vpop.f32.mrb[94].mxu1  ;;  %v1503_v19 = vpop.f32.mrb[94].mxu0 }
 0x22a   : > { %v1311_v46 = vadd.f32 %v1310_v45, %v3399_v2  ;;  %v1504_v56 = vadd.f32 %v1503_v19, %v3401_v12  ;;  %v1312_v57 = vpop.f32.mrb[95].mxu1  ;;  %v1505_v1 = vpop.f32.mrb[95].mxu0 }
 0x22b   : > { %v2592_v24 = vpack.c.bf16 %v1309_v15, %v1307_v37  ;;  %v2593_v34 = vpack.c.bf16 %v1502_v43, %v1500_v35  ;;  %v1313_v44 = vadd.f32 %v1312_v57, %v3403_v13  ;;  %v1506_v54 = vadd.f32 %v1505_v1, %v3405_v23 }
 0x22d   : > { %2175 = vst [vmem:[%s3438_s9 + $0x2d8] sm:$0xff] %v2592_v24  ;;  %2176 = vst [vmem:[%s3438_s9 + $0x2e0] sm:$0xff] %v2593_v34  ;;  %v2595_v2 = vpack.c.bf16 %v1313_v44, %v1311_v46  ;;  %v2596_v12 = vpack.c.bf16 %v1506_v54, %v1504_v56 }
 0x22f   : > { %2178 = vst [vmem:[%s3438_s9 + $0x2f0] sm:$0xff] %v2595_v2  ;;  %2179 = vst [vmem:[%s3438_s9 + $0x2f8] sm:$0xff] %v2596_v12 }
 0x230   : > { %2925 = shalt.err (!%p2922_p5)
}
 0x231   : > { %s2926_s29 = scalar_lea.hbm %s3721_s26, 12288  ;;  %s2930_s20 = scalar_lea.hbm %s3779_s3, 24576 }
 0x232   : > { %p2927_p9 = scmp.ne.s32.totalorder %s3721_s26, %s2926_s29  ;;  %p2931_p3 = scmp.lt.u32.totalorder %s3721_s26, %s3779_s3 }
 0x233   : > { %p2932_p7 = scmp.lt.u32.totalorder %s2930_s20, %s2926_s29  ;;  %p2934_p4 = scmp.lt.u32.totalorder %s2926_s29, %s3721_s26 }
 0x234   : > { %p2928_p1 = pnand %p2927_p9, %p3125_p10 }
 0x235   : > { %p2933_p13 = por %p2932_p7, %p2931_p3 }
 0x236   : > { %p2929_p2 = pneg %p2928_p1 }
 0x237   : > { %p2935_p6 = por %p2934_p4, %p2933_p13 }
 0x239   : > { %p2936_p8 = pnand %p2935_p6, %p2929_p2 }
 0x23b   : > { %2939 = shalt.err (!%p2936_p8)
}
 0x23c   : > { %s3007_s9 = smov 384   ;;  %s3008_s10 = smov 24  }
 0x23d   : > { %2637 = dma.vmem_to_hbm [thread:$0]  (%p3125_p10), %s3723_s11, 12288, %s3721_s26, %s2181_s7, %s3007_s9, %s3007_s9, %s3008_s10  }
 0x23e PF: > { %s2212_s15 = sand.u32 1, %s2978_s12   ;;  %p3797_p12 = scmp.ne.s32.totalorder %s3787_s23, 0 }
 0x23f   : > { %p3798_p11 = scmp.ge.s32.totalorder %s2998_s17, 2  ;;  %s2213_s18 = scalar_lea.sflag [#allocation4], %s2212_s15 }
 0x241   : > { %p2648_p0 = pnand %p3798_p11, %p3797_p12 }
 0x243   : > { %2973 = dma.done.wait (!%p2648_p0), %s2213_s18, 12288  }
 0x244   : > { %2975 = vsyncadd (!%p2648_p0), %s2213_s18, 4294955008  ;;  %s20_s17 = sadd.s32 1, %s2998_s17   ;;  %s3799_s12 = smov %s2982_s13 }
 0x245   : > { %p17_p5 = scmp.ge.s32.totalorder %s20_s17, 4   ;;  %s3800_s13 = smov %s2986_s14 }
 0x246   : > { %s3801_s14 = smov %s3134_s5  ;;  %s3802_s15 = smov %s2994_s16 }
 0x247   : > { %s3803_s16 = smov %s3805_s28  ;;  %19 = sbr.rel (!%p17_p5) target bundleno = 7 (0x7), region = 81 }
 0x24e   :  { %2218 = vsyncpa [#allocation3], 1 }
 0x24f   :  { %2220 = vsyncpa [#allocation3 + $0x1], 1 }
 0x250   :  { %2221 = vsyncpa [#allocation6], 1 }
 0x251   :  { %2222 = vsyncpa [#allocation4], 1 }
 0x252   :  { %2224 = vsyncpa [#allocation4 + $0x1], 1 }

</bundles_post_ra>
